<compile_context>
chip_gen: v6e
topology: v6e:2x2x1
jax: 0.10.0
libtpu: 0.0.40
codegen_flags: <defaults>
</compile_context>

<pallas_src>
import numpy as np
import jax
import jax.numpy as jnp
from jax import lax
from jax.experimental import pallas as pl
from jax.experimental.pallas import tpu as pltpu

EPS = 1e-5
K_TILE = 2048                     # K-chunk (multiple of 128) for matmul #1 when C_in*64 is large
VMEM_BUDGET = 40 * 1024 * 1024    # target working-set bound; batch tile shrinks to fit


def _cdiv(a, b):
    return -(-a // b)


def _round_up(a, b):
    return _cdiv(a, b) * b


# ----------------------------------------------------------------------------- kernel
def aux_head_kernel(x_ref, wa_ref, ba_ref, wb_ref, bb_ref, wc_ref, bc_ref,
                    out_ref, acc_ref):
    """Grid = (batch tiles, K tiles). K is the reduction axis of the first matmul."""
    k = pl.program_id(1)

    @pl.when(k == 0)
    def _():
        acc_ref[...] = jnp.zeros_like(acc_ref)

    # relu1 is elementwise & layout-free; padded rows/cols are zeros -> stay zero.
    x = jnp.maximum(x_ref[...], 0.0)
    # avgpool(5,3) + conv1(1x1) + bn1 folded into one matmul, accumulated over K in f32.
    acc_ref[...] += jnp.dot(x, wa_ref[...], preferred_element_type=jnp.float32)

    @pl.when(k == pl.num_programs(1) - 1)
    def _():
        # bias + relu2 in f32, cast only for the MXU operands.
        y1 = jnp.maximum(acc_ref[...] + ba_ref[...], 0.0).astype(wb_ref.dtype)
        # conv2(2x2, VALID on the 2x2 pooled map) + bn2 folded into one matmul.
        y2 = jnp.dot(y1, wb_ref[...], preferred_element_type=jnp.float32) + bb_ref[...]
        y2 = jnp.maximum(y2, 0.0).astype(wc_ref.dtype)                      # relu3
        # classifier (classes padded to a lane-dense multiple of 128).
        out = jnp.dot(y2, wc_ref[...], preferred_element_type=jnp.float32) + bc_ref[...]
        out_ref[...] = out.astype(out_ref.dtype)


# ----------------------------------------------------------------------------- parameter fold
def _pool_matrix(H=8, W=8):
    """(H*W, 4): column p = ph*2+pw averages the 5x5 window starting at (3ph, 3pw).
    padding=0 => every window has exactly 25 elements (count_include_pad irrelevant)."""
    pm = np.zeros((H * W, 4), np.float32)
    for ph in range(2):
        for pw in range(2):
            p = ph * 2 + pw
            for dh in range(5):
                for dw in range(5):
                    pm[(3 * ph + dh) * W + (3 * pw + dw), p] = 1.0 / 25.0
    return jnp.asarray(pm)


def fold_params(params, C_in, classes, *, use_bf16=True):
    """Fold {pool,conv1,bn1}, {conv2,bn2}, {classifier} into three (W, b) pairs.

    Call ONCE outside the hot loop and reuse the result (the fold is O(C_in*64*512)
    work that should not be redone every forward). Weights default to bf16 (the
    MXU-native dtype on v5e/v6e/v7x); biases and all accumulation stay f32.
    """
    compute_dtype = jnp.bfloat16 if use_bf16 else jnp.float32
    # eval-mode BN: y = x*scale + (beta - mean*scale), scale = gamma * rsqrt(var + eps)
    s1 = params["g1"] * lax.rsqrt(params["v1"] + EPS)                  # (128,)
    s2 = params["g2"] * lax.rsqrt(params["v2"] + EPS)                  # (768,)
    bias1 = params["b1"] - params["m1"] * s1
    bias2 = params["b2"] - params["m2"] * s2

    pool = _pool_matrix()                                              # (64, 4)
    w1m = params["w1"].reshape(128, C_in).T * s1[None, :]              # (C_in, 128), BN1 folded
    # W_a[c*64+w, p*128+o] = pool[w, p] * w1[o, c] * s1[o]
    wa = jnp.einsum("wp,co->cwpo", pool, w1m).reshape(C_in * 64, 4 * 128)
    ba = jnp.tile(bias1, 4).reshape(1, 4 * 128)

    # W_b[p*128+o, oo] = w2[oo, o, ph, pw] * s2[oo],  p = ph*2 + pw
    wb = jnp.transpose(params["w2"], (2, 3, 1, 0)).reshape(4 * 128, 768) * s2[None, :]
    bb = bias2.reshape(1, 768)

    c_pad = max(128, _round_up(classes, 128))
    wc = jnp.pad(params["wfc"].T, ((0, 0), (0, c_pad - classes)))      # (768, c_pad)
    bc = jnp.pad(params["bfc"], (0, c_pad - classes)).reshape(1, c_pad)

    return dict(wa=wa.astype(compute_dtype), ba=ba.astype(jnp.float32),
                wb=wb.astype(compute_dtype), bb=bb.astype(jnp.float32),
                wc=wc.astype(compute_dtype), bc=bc.astype(jnp.float32))


# ----------------------------------------------------------------------------- forward
def _num_tensorcores():
    """2 on v7x (2 TensorCores/chip, needs CORE_PARALLEL), else 1."""
    try:
        kind = jax.devices()[0].device_kind.lower()
    except Exception:
        return 1
    return 2 if ("v7" in kind or "7x" in kind) else 1


def aux_head_forward(x_nchw, folded, classes, *, batch_tile=512):
    N, C_in, H, W = x_nchw.shape
    assert (H, W) == (8, 8), "AuxHeadCIFAR assumes 8x8 input"
    wa, ba, wb, bb, wc, bc = (folded[k] for k in ("wa", "ba", "wb", "bb", "wc", "bc"))
    c_pad = wc.shape[1]
    k_in = C_in * H * W
    assert wa.shape[0] == k_in
    itemsize = jnp.dtype(wa.dtype).itemsize

    # --- K tiling of the folded pool+conv1+bn1 matmul (large C_in) -----------
    if k_in > K_TILE:
        tk = K_TILE
        k_pad = _round_up(k_in, tk)
    else:
        tk, k_pad = k_in, k_in

    # --- batch tiling (VMEM-aware, both TensorCores busy on v7x) -------------
    n_cores = _num_tensorcores()
    tb = batch_tile
    if n_cores > 1 and N > 8 * n_cores:
        tb = min(tb, _round_up(_cdiv(N, n_cores), 8))    # >=2 grid steps for CORE_PARALLEL
    tb = min(tb, _round_up(N, 8))
    tb = max(8, _round_up(tb, 8))

    def vmem_bytes(tb_):
        b = 2 * tb_ * tk * itemsize                       # x tile (double-buffered)
        b += 2 * tk * 512 * itemsize                      # wa K-chunk
        b += 2 * (512 * 768 + 768 * c_pad) * itemsize     # wb, wc (constant, default 2x buffers)
        b += 2 * (512 + 768 + c_pad) * 4                  # f32 biases
        b += 2 * tb_ * c_pad * 4                          # out tile
        b += tb_ * 512 * 4                                # f32 accumulator scratch
        b += tb_ * (512 + 768 + c_pad) * 4                # in-kernel intermediates (y1/y2/out)
        return b

    while vmem_bytes(tb) > VMEM_BUDGET and tb > 8:
        tb = max(8, _round_up(tb // 2, 8))
    n_pad = _round_up(N, tb)

    # --- pad inputs to the tile grid (zeros are inert: relu(0)=0, zero W rows)
    x_flat = x_nchw.reshape(N, k_in).astype(wa.dtype)     # contiguous reshape, no transpose
    if n_pad != N or k_pad != k_in:
        x_flat = jnp.pad(x_flat, ((0, n_pad - N), (0, k_pad - k_in)))
    wa_p = jnp.pad(wa, ((0, k_pad - k_in), (0, 0))) if k_pad != k_in else wa

    grid = (n_pad // tb, k_pad // tk)
    batch_sem = pltpu.CORE_PARALLEL if n_cores > 1 else pltpu.PARALLEL

    cost = pl.CostEstimate(
        flops=2 * n_pad * (k_pad * 512 + 512 * 768 + 768 * c_pad),
        transcendentals=0,
        bytes_accessed=(n_pad * k_pad * itemsize
                        + (k_pad * 512 + 512 * 768 + 768 * c_pad) * itemsize
                        + (512 + 768 + c_pad) * 4
                        + n_pad * c_pad * 4),
    )

    bcast = lambda shape: pl.BlockSpec(shape, lambda n, k: (0, 0))
    # TODO(synk): the six constant-index weight/bias blocks could be single-buffered
    #             (pipeline_mode=pl.Buffered(1)) to reclaim VMEM headroom on v7x; kept
    #             at the default here and accounted for (2x) in vmem_bytes() instead.
    out = pl.pallas_call(
        aux_head_kernel,
        out_shape=jax.ShapeDtypeStruct((n_pad, c_pad), jnp.float32),
        grid_spec=pltpu.PrefetchScalarGridSpec(
            num_scalar_prefetch=0,
            grid=grid,
            in_specs=[
                pl.BlockSpec((tb, tk), lambda n, k: (n, k)),        # x (batch- and K-tiled)
                pl.BlockSpec((tk, 4 * 128), lambda n, k: (k, 0)),   # folded pool+conv1+bn1 (K-tiled)
                bcast((1, 4 * 128)),                                # its bias
                bcast((4 * 128, 768)), bcast((1, 768)),             # folded conv2+bn2
                bcast((768, c_pad)), bcast((1, c_pad)),             # classifier (lane-dense pad)
            ],
            out_specs=pl.BlockSpec((tb, c_pad), lambda n, k: (n, 0)),
            scratch_shapes=[pltpu.VMEM((tb, 4 * 128), jnp.float32)],
        ),
        compiler_params=pltpu.CompilerParams(
            dimension_semantics=(batch_sem, pltpu.ARBITRARY),
            vmem_limit_bytes=int(min(60 * 2**20, max(32 * 2**20, 1.25 * vmem_bytes(tb)))),
        ),
        cost_estimate=cost,
    )(x_flat, wa_p, ba, wb, bb, wc, bc)
    return out[:N, :classes]


# ----------------------------------------------------------------------------- reference
def reference(x, params):
    """Independent pure-JAX reference (lax convs / reduce_window), eval-mode BN."""
    xr = jax.nn.relu(x)
    pooled = lax.reduce_window(xr, 0.0, lax.add, (1, 1, 5, 5), (1, 1, 3, 3), "VALID") / 25.0
    dn = ("NCHW", "OIHW", "NCHW")
    y1 = lax.conv_general_dilated(pooled, params["w1"], (1, 1), "VALID", dimension_numbers=dn)
    y1 = ((y1 - params["m1"][None, :, None, None])
          / jnp.sqrt(params["v1"] + EPS)[None, :, None, None]
          * params["g1"][None, :, None, None] + params["b1"][None, :, None, None])
    y1 = jax.nn.relu(y1)
    y2 = lax.conv_general_dilated(y1, params["w2"], (1, 1), "VALID", dimension_numbers=dn)
    y2 = ((y2 - params["m2"][None, :, None, None])
          / jnp.sqrt(params["v2"] + EPS)[None, :, None, None]
          * params["g2"][None, :, None, None] + params["b2"][None, :, None, None])
    y2 = jax.nn.relu(y2)
    flat = y2.reshape(y2.shape[0], -1)
    return flat @ params["wfc"].T + params["bfc"]


if __name__ == "__main__":
    N, C_in, classes = 2, 4, 10
    key = jax.random.PRNGKey(0)
    ks = jax.random.split(key, 16)
    x = jax.random.normal(ks[0], (N, C_in, 8, 8), jnp.float32)
    params = dict(
        w1=0.2 * jax.random.normal(ks[1], (128, C_in, 1, 1), jnp.float32),
        g1=1.0 + 0.1 * jax.random.normal(ks[2], (128,), jnp.float32),
        b1=0.1 * jax.random.normal(ks[3], (128,), jnp.float32),
        m1=0.1 * jax.random.normal(ks[4], (128,), jnp.float32),
        v1=jax.random.uniform(ks[5], (128,), jnp.float32, minval=0.5, maxval=1.5),
        w2=0.05 * jax.random.normal(ks[6], (768, 128, 2, 2), jnp.float32),
        g2=1.0 + 0.1 * jax.random.normal(ks[7], (768,), jnp.float32),
        b2=0.1 * jax.random.normal(ks[8], (768,), jnp.float32),
        m2=0.1 * jax.random.normal(ks[9], (768,), jnp.float32),
        v2=jax.random.uniform(ks[10], (768,), jnp.float32, minval=0.5, maxval=1.5),
        wfc=0.05 * jax.random.normal(ks[11], (classes, 768), jnp.float32),
        bfc=0.1 * jax.random.normal(ks[12], (classes,), jnp.float32),
    )

    ref = jax.block_until_ready(reference(x, params))

    # f32-operand path: strict 1e-3 check against the pure-JAX reference.
    folded_f32 = fold_params(params, C_in, classes, use_bf16=False)
    out_f32 = jax.block_until_ready(aux_head_forward(x, folded_f32, classes))
    assert out_f32.shape == (N, classes), out_f32.shape
    if not np.allclose(np.asarray(out_f32), np.asarray(ref), rtol=1e-3, atol=1e-3):
        raise AssertionError(f"f32 mismatch vs reference:\n{out_f32}\nvs\n{ref}")

    # bf16 MXU-operand path (default; f32 accumulation): relaxed tolerance gate.
    folded_bf16 = fold_params(params, C_in, classes, use_bf16=True)
    out_bf16 = jax.block_until_ready(aux_head_forward(x, folded_bf16, classes))
    assert out_bf16.shape == (N, classes), out_bf16.shape
    if not np.allclose(np.asarray(out_bf16), np.asarray(ref), rtol=3e-2, atol=3e-2):
        raise AssertionError(f"bf16 mismatch vs reference:\n{out_bf16}\nvs\n{ref}")

    print("KERNEL_OK")
</pallas_src>

<mosaic_0001>
module attributes {stable_mosaic.version = 11 : i64} {
  func.func @aux_head_kernel(%arg0: i32, %arg1: i32, %arg2: memref<8x256xf32, #tpu.memory_space<vmem>>, %arg3: memref<256x512xf32, #tpu.memory_space<vmem>>, %arg4: memref<1x512xf32, #tpu.memory_space<vmem>>, %arg5: memref<512x768xf32, #tpu.memory_space<vmem>>, %arg6: memref<1x768xf32, #tpu.memory_space<vmem>>, %arg7: memref<768x128xf32, #tpu.memory_space<vmem>>, %arg8: memref<1x128xf32, #tpu.memory_space<vmem>>, %arg9: memref<8x128xf32, #tpu.memory_space<vmem>>, %arg10: memref<8x512xf32, #tpu.memory_space<vmem>>) attributes {dimension_semantics = [#tpu.dimension_semantics<parallel>, #tpu.dimension_semantics<arbitrary>], iteration_bounds = array<i64: 1, 1>, scalar_prefetch = 0 : i64, scratch_operands = 1 : i64, tpu.core_type = #tpu.core_type<tc>, window_params = [{transform_indices = @transform_0, window_bounds = array<i64: 8, 256>}, {transform_indices = @transform_1, window_bounds = array<i64: 256, 512>}, {pipeline_mode = #tpu.pipeline_mode<synchronous>, transform_indices = @transform_2, window_bounds = array<i64: 1, 512>}, {pipeline_mode = #tpu.pipeline_mode<synchronous>, transform_indices = @transform_3, window_bounds = array<i64: 512, 768>}, {pipeline_mode = #tpu.pipeline_mode<synchronous>, transform_indices = @transform_4, window_bounds = array<i64: 1, 768>}, {pipeline_mode = #tpu.pipeline_mode<synchronous>, transform_indices = @transform_5, window_bounds = array<i64: 768, 128>}, {pipeline_mode = #tpu.pipeline_mode<synchronous>, transform_indices = @transform_6, window_bounds = array<i64: 1, 128>}, {transform_indices = @transform_7, window_bounds = array<i64: 8, 128>}]} {
    %c0_i32 = arith.constant 0 : i32
    %0 = arith.cmpi eq, %arg1, %c0_i32 : i32
    %1 = arith.extui %0 : i1 to i32
    %c0_i32_0 = arith.constant 0 : i32
    %2 = arith.cmpi ne, %1, %c0_i32_0 : i32
    scf.if %2 {
      %cst_11 = arith.constant 0.000000e+00 : f32
      %14 = vector.broadcast %cst_11 : f32 to vector<8x512xf32>
      %c0_12 = arith.constant 0 : index
      %c0_13 = arith.constant 0 : index
      %15 = vector.load %arg10[%c0_12, %c0_13] : memref<8x512xf32, #tpu.memory_space<vmem>>, vector<8x512xf32>
      tpu.vector_store %arg10[%c0_12, %c0_13], %14 {strides = array<i32>} : memref<8x512xf32, #tpu.memory_space<vmem>>, vector<8x512xf32>,
    } else {
    }
    %c0 = arith.constant 0 : index
    %c0_1 = arith.constant 0 : index
    %3 = vector.load %arg2[%c0, %c0_1] : memref<8x256xf32, #tpu.memory_space<vmem>>, vector<8x256xf32>
    %cst = arith.constant 0.000000e+00 : f32
    %4 = vector.broadcast %cst : f32 to vector<8x256xf32>
    %5 = arith.maximumf %3, %4 : vector<8x256xf32>
    %c0_2 = arith.constant 0 : index
    %c0_3 = arith.constant 0 : index
    %6 = vector.load %arg10[%c0_2, %c0_3] : memref<8x512xf32, #tpu.memory_space<vmem>>, vector<8x512xf32>
    %c0_4 = arith.constant 0 : index
    %c0_5 = arith.constant 0 : index
    %7 = vector.load %arg3[%c0_4, %c0_5] : memref<256x512xf32, #tpu.memory_space<vmem>>, vector<256x512xf32>
    %cst_6 = arith.constant dense<0.000000e+00> : vector<8x512xf32>
    %8 = tpu.matmul %5, %7, %cst_6 {dimension_numbers = #tpu.dot_dimension_numbers<[1], [0], [0], [1], [0, 0, 1, 1], [], []>} : vector<8x256xf32>, vector<256x512xf32>, vector<8x512xf32> -> vector<8x512xf32>
    %9 = arith.addf %6, %8 : vector<8x512xf32>
    %c0_7 = arith.constant 0 : index
    %c0_8 = arith.constant 0 : index
    %10 = vector.load %arg10[%c0_7, %c0_8] : memref<8x512xf32, #tpu.memory_space<vmem>>, vector<8x512xf32>
    tpu.vector_store %arg10[%c0_7, %c0_8], %9 {strides = array<i32>} : memref<8x512xf32, #tpu.memory_space<vmem>>, vector<8x512xf32>,
    %c0_i32_9 = arith.constant 0 : i32
    %11 = arith.cmpi eq, %arg1, %c0_i32_9 : i32
    %12 = arith.extui %11 : i1 to i32
    %c0_i32_10 = arith.constant 0 : i32
    %13 = arith.cmpi ne, %12, %c0_i32_10 : i32
    scf.if %13 {
      %c0_11 = arith.constant 0 : index
      %c0_12 = arith.constant 0 : index
      %14 = vector.load %arg10[%c0_11, %c0_12] : memref<8x512xf32, #tpu.memory_space<vmem>>, vector<8x512xf32>
      %c0_13 = arith.constant 0 : index
      %c0_14 = arith.constant 0 : index
      %15 = vector.load %arg4[%c0_13, %c0_14] : memref<1x512xf32, #tpu.memory_space<vmem>>, vector<1x512xf32>
      %16 = vector.broadcast %15 : vector<1x512xf32> to vector<8x512xf32>
      %17 = arith.addf %14, %16 : vector<8x512xf32>
      %cst_15 = arith.constant 0.000000e+00 : f32
      %18 = vector.broadcast %cst_15 : f32 to vector<8x512xf32>
      %19 = arith.maximumf %17, %18 : vector<8x512xf32>
      %c0_16 = arith.constant 0 : index
      %c0_17 = arith.constant 0 : index
      %20 = vector.load %arg5[%c0_16, %c0_17] : memref<512x768xf32, #tpu.memory_space<vmem>>, vector<512x768xf32>
      %cst_18 = arith.constant dense<0.000000e+00> : vector<8x768xf32>
      %21 = tpu.matmul %19, %20, %cst_18 {dimension_numbers = #tpu.dot_dimension_numbers<[1], [0], [0], [1], [0, 0, 1, 1], [], []>} : vector<8x512xf32>, vector<512x768xf32>, vector<8x768xf32> -> vector<8x768xf32>
      %c0_19 = arith.constant 0 : index
      %c0_20 = arith.constant 0 : index
      %22 = vector.load %arg6[%c0_19, %c0_20] : memref<1x768xf32, #tpu.memory_space<vmem>>, vector<1x768xf32>
      %23 = vector.broadcast %22 : vector<1x768xf32> to vector<8x768xf32>
      %24 = arith.addf %21, %23 : vector<8x768xf32>
      %cst_21 = arith.constant 0.000000e+00 : f32
      %25 = vector.broadcast %cst_21 : f32 to vector<8x768xf32>
      %26 = arith.maximumf %24, %25 : vector<8x768xf32>
      %c0_22 = arith.constant 0 : index
      %c0_23 = arith.constant 0 : index
      %27 = vector.load %arg7[%c0_22, %c0_23] : memref<768x128xf32, #tpu.memory_space<vmem>>, vector<768x128xf32>
      %cst_24 = arith.constant dense<0.000000e+00> : vector<8x128xf32>
      %28 = tpu.matmul %26, %27, %cst_24 {dimension_numbers = #tpu.dot_dimension_numbers<[1], [0], [0], [1], [0, 0, 1, 1], [], []>} : vector<8x768xf32>, vector<768x128xf32>, vector<8x128xf32> -> vector<8x128xf32>
      %c0_25 = arith.constant 0 : index
      %c0_26 = arith.constant 0 : index
      %29 = vector.load %arg8[%c0_25, %c0_26] : memref<1x128xf32, #tpu.memory_space<vmem>>, vector<1x128xf32>
      %30 = vector.broadcast %29 : vector<1x128xf32> to vector<8x128xf32>
      %31 = arith.addf %28, %30 : vector<8x128xf32>
      %c0_27 = arith.constant 0 : index
      %c0_28 = arith.constant 0 : index
      %32 = vector.load %arg9[%c0_27, %c0_28] : memref<8x128xf32, #tpu.memory_space<vmem>>, vector<8x128xf32>
      tpu.vector_store %arg9[%c0_27, %c0_28], %31 {strides = array<i32>} : memref<8x128xf32, #tpu.memory_space<vmem>>, vector<8x128xf32>,
    } else {
    }
    return
  }
  func.func @transform_0(%arg0: i32, %arg1: i32) -> (i32, i32) {
    %c0_i32 = arith.constant 0 : i32
    return %arg0, %arg1 : i32, i32
  }
  func.func @transform_1(%arg0: i32, %arg1: i32) -> (i32, i32) {
    %c0_i32 = arith.constant 0 : i32
    %c0_i32_0 = arith.constant 0 : i32
    return %arg1, %c0_i32 : i32, i32
  }
  func.func @transform_2(%arg0: i32, %arg1: i32) -> (i32, i32) {
    %c0_i32 = arith.constant 0 : i32
    %c0_i32_0 = arith.constant 0 : i32
    %c0_i32_1 = arith.constant 0 : i32
    return %c0_i32, %c0_i32_0 : i32, i32
  }
  func.func @transform_3(%arg0: i32, %arg1: i32) -> (i32, i32) {
    %c0_i32 = arith.constant 0 : i32
    %c0_i32_0 = arith.constant 0 : i32
    %c0_i32_1 = arith.constant 0 : i32
    return %c0_i32, %c0_i32_0 : i32, i32
  }
  func.func @transform_4(%arg0: i32, %arg1: i32) -> (i32, i32) {
    %c0_i32 = arith.constant 0 : i32
    %c0_i32_0 = arith.constant 0 : i32
    %c0_i32_1 = arith.constant 0 : i32
    return %c0_i32, %c0_i32_0 : i32, i32
  }
  func.func @transform_5(%arg0: i32, %arg1: i32) -> (i32, i32) {
    %c0_i32 = arith.constant 0 : i32
    %c0_i32_0 = arith.constant 0 : i32
    %c0_i32_1 = arith.constant 0 : i32
    return %c0_i32, %c0_i32_0 : i32, i32
  }
  func.func @transform_6(%arg0: i32, %arg1: i32) -> (i32, i32) {
    %c0_i32 = arith.constant 0 : i32
    %c0_i32_0 = arith.constant 0 : i32
    %c0_i32_1 = arith.constant 0 : i32
    return %c0_i32, %c0_i32_0 : i32, i32
  }
  func.func @transform_7(%arg0: i32, %arg1: i32) -> (i32, i32) {
    %c0_i32 = arith.constant 0 : i32
    %c0_i32_0 = arith.constant 0 : i32
    return %arg0, %c0_i32 : i32, i32
  }
}

</mosaic_0001>

<bundles_post_ra>
// kernel: tpu_custom_call.1
= control target key start
LH: loop header
LB: loop body
LE: loop exit
PB: predicated region body
PF: predicated region fallthrough
CT: control target
= control target key end

     0   :  { %12 = vsyncpa [#allocation4], 0  ;;  %s2045_s0 = inlined_call_operand.hbm [shape: f32[8,256], index: 0, kind: input, shape index: {}]   ;;  %s2046_s1 = inlined_call_operand.hbm [shape: f32[256,512], index: 1, kind: input, shape index: {}]   ;;  %s2047_s2 = inlined_call_operand.hbm [shape: f32[1,512], index: 2, kind: input, shape index: {}]   ;;  %s2048_s3 = inlined_call_operand.hbm [shape: f32[512,768], index: 3, kind: input, shape index: {}]   ;;  %s2049_s4 = inlined_call_operand.hbm [shape: f32[1,768], index: 4, kind: input, shape index: {}]   ;;  %s2050_s5 = inlined_call_operand.hbm [shape: f32[768,128], index: 5, kind: input, shape index: {}]   ;;  %s2051_s6 = inlined_call_operand.hbm [shape: f32[1,128], index: 6, kind: input, shape index: {}]   ;;  %s2052_s7 = inlined_call_operand.hbm [shape: f32[8,128], index: 7, kind: output, shape index: {}]  }
   0x1   :  { %13 = vsyncpa [#allocation7], 0 }
   0x2   :  { %14 = vsyncpa [#allocation10], 0 }
   0x3   :  { %15 = vsyncpa [#allocation13], 0 }
   0x4   :  { %16 = vsyncpa [#allocation5], 0  ;;  %s1915_s24 = smov [#allocation6]  }
   0x5   :  { %s32_s25 = sshll.u32 %s1915_s24, 4  ;;  %s33_s25 = int_to_ptr.vmem [resolvable:$true] %s32_s25 }
   0x6   :  { %s1753_s26 = scalar_lea.vmem %s33_s25, 16384  ;;  %p1758_p1 = scmp.lt.s32.totalorder %s33_s25, %s33_s25 }
   0x7   :  { %p1754_p0 = scmp.ne.s32.totalorder %s33_s25, %s1753_s26  ;;  %p1759_p2 = scmp.lt.s32.totalorder %s1753_s26, %s1753_s26 }
   0x9   :  { %p1760_p3 = por %p1759_p2, %p1758_p1 }
   0xb   :  { %p1761_p4 = pnand %p1760_p3, %p1754_p0 }
   0xd   :  { %1764 = shalt.err (!%p1761_p4)
}
   0xe   :  { %s1916_s27 = smov 512   ;;  %s1917_s28 = smov 32  }
   0xf   :  { %38 = dma.hbm_to_vmem [thread:$0]  %s2046_s1, 16384, %s33_s25, [#allocation7], %s1916_s27, %s1916_s27, %s1917_s28  }
  0x10   :  { %s1918_s8 = smov [#allocation9]  }
  0x11   :  { %s54_s9 = sshll.u32 %s1918_s8, 4  ;;  %s55_s9 = int_to_ptr.vmem [resolvable:$true] %s54_s9 }
  0x12   :  { %s1773_s10 = scalar_lea.vmem %s55_s9, 49152  ;;  %p1778_p6 = scmp.lt.s32.totalorder %s55_s9, %s55_s9 }
  0x13   :  { %p1774_p5 = scmp.ne.s32.totalorder %s55_s9, %s1773_s10  ;;  %p1779_p7 = scmp.lt.s32.totalorder %s1773_s10, %s1773_s10 }
  0x15   :  { %p1780_p8 = por %p1779_p7, %p1778_p6 }
  0x17   :  { %p1781_p9 = pnand %p1780_p8, %p1774_p5 }
  0x19   :  { %1784 = shalt.err (!%p1781_p9)
}
  0x1a   :  { %s1919_s11 = smov 768   ;;  %s1920_s12 = smov 48  }
  0x1b   :  { %60 = dma.hbm_to_vmem [thread:$0]  %s2048_s3, 49152, %s55_s9, [#allocation10], %s1919_s11, %s1919_s11, %s1920_s12  }
  0x1c   :  { %s1921_s15 = smov [#allocation12]  }
  0x1d   :  { %s76_s16 = sshll.u32 %s1921_s15, 4  ;;  %s77_s16 = int_to_ptr.vmem [resolvable:$true] %s76_s16 }
  0x1e   :  { %s1793_s1 = scalar_lea.vmem %s77_s16, 12288  ;;  %p1798_p11 = scmp.lt.s32.totalorder %s77_s16, %s77_s16 }
  0x1f   :  { %p1794_p10 = scmp.ne.s32.totalorder %s77_s16, %s1793_s1  ;;  %p1799_p12 = scmp.lt.s32.totalorder %s1793_s1, %s1793_s1 }
  0x21   :  { %p1800_p13 = por %p1799_p12, %p1798_p11 }
  0x23   :  { %p1801_p0 = pnand %p1800_p13, %p1794_p10 }
  0x25   :  { %1804 = shalt.err (!%p1801_p0)
}
  0x26   :  { %s1922_s17 = smov 128   ;;  %s1923_s18 = smov 8  }
  0x27   :  { %82 = dma.hbm_to_vmem [thread:$0]  %s2050_s5, 12288, %s77_s16, [#allocation13], %s1922_s17, %s1922_s17, %s1923_s18  }
  0x28   :  { %s1924_s21 = smov [#allocation3]   ;;  %s1925_s3 = smov [#allocation8]  }
  0x29   :  { %s23_s22 = sshll.u32 %s1924_s21, 4  ;;  %s45_s23 = sshll.u32 %s1925_s3, 4  ;;  %s24_s22 = int_to_ptr.vmem [resolvable:$true] %s23_s22  ;;  %s46_s23 = int_to_ptr.vmem [resolvable:$true] %s45_s23 }
  0x2a   :  { %s1813_s24 = scalar_lea.vmem %s24_s22, 256  ;;  %p1818_p2 = scmp.lt.s32.totalorder %s24_s22, %s24_s22 }
  0x2b   :  { %p1814_p1 = scmp.ne.s32.totalorder %s24_s22, %s1813_s24  ;;  %p1819_p3 = scmp.lt.s32.totalorder %s1813_s24, %s1813_s24 }
  0x2d   :  { %p1820_p4 = por %p1819_p3, %p1818_p2 }
  0x2f   :  { %p1821_p5 = pnand %p1820_p4, %p1814_p1 }
  0x31   :  { %1824 = shalt.err (!%p1821_p5)
}
  0x32   :  { %26 = dma.hbm_to_vmem [thread:$0]  %s2045_s0, 256, %s24_s22, [#allocation4]  }
  0x33   :  { %s1833_s27 = scalar_lea.vmem %s46_s23, 64  ;;  %p1838_p7 = scmp.lt.s32.totalorder %s46_s23, %s46_s23 }
  0x34   :  { %p1834_p6 = scmp.ne.s32.totalorder %s46_s23, %s1833_s27  ;;  %p1839_p8 = scmp.lt.s32.totalorder %s1833_s27, %s1833_s27 }
  0x36   :  { %p1840_p9 = por %p1839_p8, %p1838_p7 }
  0x38   :  { %p1841_p10 = pnand %p1840_p9, %p1834_p6 }
  0x3a   :  { %1844 = shalt.err (!%p1841_p10)
}
  0x3b   :  { %48 = dma.hbm_to_vmem [thread:$0]  %s2047_s2, 64, %s46_s23, [#allocation7]  }
  0x3c   :  { %s1926_s29 = smov [#allocation11]   ;;  %s1927_s8 = smov [#allocation14]  }
  0x3d   :  { %s67_s30 = sshll.u32 %s1926_s29, 4  ;;  %s89_s9 = sshll.u32 %s1927_s8, 4  ;;  %s68_s30 = int_to_ptr.vmem [resolvable:$true] %s67_s30  ;;  %s90_s9 = int_to_ptr.vmem [resolvable:$true] %s89_s9 }
  0x3e   :  { %s1853_s10 = scalar_lea.vmem %s68_s30, 96  ;;  %p1858_p12 = scmp.lt.s32.totalorder %s68_s30, %s68_s30 }
  0x3f   :  { %p1854_p11 = scmp.ne.s32.totalorder %s68_s30, %s1853_s10  ;;  %p1859_p13 = scmp.lt.s32.totalorder %s1853_s10, %s1853_s10 }
  0x41   :  { %p1860_p0 = por %p1859_p13, %p1858_p12 }
  0x43   :  { %p1861_p1 = pnand %p1860_p0, %p1854_p11 }
  0x45   :  { %1864 = shalt.err (!%p1861_p1)
}
  0x46   :  { %70 = dma.hbm_to_vmem [thread:$0]  %s2049_s4, 96, %s68_s30, [#allocation10]  }
  0x47   :  { %s1873_s12 = scalar_lea.vmem %s90_s9, 16  ;;  %s1877_s2 = scalar_lea.vmem %s90_s9, 32 }
  0x48   :  { %p1874_p2 = scmp.ne.s32.totalorder %s90_s9, %s1873_s12  ;;  %p1878_p3 = scmp.lt.s32.totalorder %s90_s9, %s90_s9 }
  0x49   :  { %p1879_p4 = scmp.lt.s32.totalorder %s1877_s2, %s1873_s12 }
  0x4b   :  { %p1880_p5 = por %p1879_p4, %p1878_p3 }
  0x4d   :  { %p1881_p6 = pnand %p1880_p5, %p1874_p2 }
  0x4f   :  { %1884 = shalt.err (!%p1881_p6)
}
  0x50   :  { %92 = dma.hbm_to_vmem [thread:$0]  %s2051_s6, 16, %s90_s9, [#allocation13]  }
  0x51   :  { %1905 = dma.done.wait [#allocation4], 256  }
  0x52   :  { %1906 = vsyncadd [#allocation4], 4294967040 }
  0x53   :  { %1907 = dma.done.wait [#allocation7], 16448  }
  0x54   :  { %1908 = vsyncadd [#allocation7], 4294950848 }
  0x55   :  { %1909 = dma.done.wait [#allocation10], 49248  }
  0x56   :  { %1910 = vsyncadd [#allocation10], 4294918048 }
  0x57   :  { %1911 = dma.done.wait [#allocation13], 12304  }
  0x58   :  { %1912 = vsyncadd [#allocation13], 4294954992  ;;  %v191_v0 = vld [vmem:[#allocation6 + $0x1e8] sm:$0xff]  ;;  %v193_v1 = vld [vmem:[#allocation6 + $0x1f8] sm:$0xff]  ;;  %s1928_s4 = smov [#allocation15]  }
  0x59   :  { %v190_v2 = vld [vmem:[#allocation6 + $0x1e0] sm:$0xff]  ;;  %258 = vmatprep.subr.mxu0 %v191_v0  ;;  %329 = vmatprep.subr.mxu1 %v193_v1  ;;  %v192_v3 = vld [vmem:[#allocation6 + $0x1f0] sm:$0xff]  ;;  %v187_v4 = vld [vmem:[#allocation6 + $0x1c8] sm:$0xff]  ;;  %s1613_s6 = sshll.u32 %s1928_s4, 4  ;;  %s1614_s6 = int_to_ptr.vmem [resolvable:$true] %s1613_s6 }
  0x5a   :  { %v189_v5 = vld [vmem:[#allocation6 + $0x1d8] sm:$0xff]  ;;  %259 = vmatpush1.msra.mxu0 %v190_v2  ;;  %330 = vmatpush1.msra.mxu1 %v192_v3  ;;  %v186_v6 = vld [vmem:[#allocation6 + $0x1c0] sm:$0xff]  ;;  %v188_v7 = vld [vmem:[#allocation6 + $0x1d0] sm:$0xff]  ;;  %s1885_s15 = scalar_lea.vmem %s1614_s6, 128  ;;  %p1890_p8 = scmp.lt.s32.totalorder %s1614_s6, %s1614_s6 }
  0x5b   :  { %v183_v8 = vld [vmem:[#allocation6 + $0x1a8] sm:$0xff]  ;;  %260 = vmatprep.subr.mxu0 %v187_v4  ;;  %331 = vmatprep.subr.mxu1 %v189_v5  ;;  %v185_v9 = vld [vmem:[#allocation6 + $0x1b8] sm:$0xff]  ;;  %v182_v10 = vld [vmem:[#allocation6 + $0x1a0] sm:$0xff]  ;;  %p1886_p7 = scmp.ne.s32.totalorder %s1614_s6, %s1885_s15  ;;  %p1891_p9 = scmp.lt.s32.totalorder %s1885_s15, %s1885_s15 }
  0x5c   :  { %v184_v11 = vld [vmem:[#allocation6 + $0x1b0] sm:$0xff]  ;;  %261 = vmatpush1.msra.mxu0 %v186_v6  ;;  %332 = vmatpush1.msra.mxu1 %v188_v7  ;;  %v179_v12 = vld [vmem:[#allocation6 + $0x188] sm:$0xff]  ;;  %v181_v13 = vld [vmem:[#allocation6 + $0x198] sm:$0xff] }
  0x5d   :  { %262 = vmatprep.subr.mxu0 %v183_v8  ;;  %333 = vmatprep.subr.mxu1 %v185_v9  ;;  %v178_v14 = vld [vmem:[#allocation6 + $0x180] sm:$0xff]  ;;  %v180_v15 = vld [vmem:[#allocation6 + $0x190] sm:$0xff]  ;;  %v175_v16 = vld [vmem:[#allocation6 + $0x168] sm:$0xff]  ;;  %p1892_p10 = por %p1891_p9, %p1890_p8 }
  0x5e   :  { %263 = vmatpush1.msra.mxu0 %v182_v10  ;;  %334 = vmatpush1.msra.mxu1 %v184_v11  ;;  %v177_v17 = vld [vmem:[#allocation6 + $0x178] sm:$0xff]  ;;  %v174_v18 = vld [vmem:[#allocation6 + $0x160] sm:$0xff]  ;;  %v176_v19 = vld [vmem:[#allocation6 + $0x170] sm:$0xff] }
  0x5f   :  { %264 = vmatprep.subr.mxu0 %v179_v12  ;;  %335 = vmatprep.subr.mxu1 %v181_v13  ;;  %v171_v20 = vld [vmem:[#allocation6 + $0x148] sm:$0xff]  ;;  %v173_v21 = vld [vmem:[#allocation6 + $0x158] sm:$0xff]  ;;  %v170_v22 = vld [vmem:[#allocation6 + $0x140] sm:$0xff]  ;;  %p1893_p11 = pnand %p1892_p10, %p1886_p7 }
  0x60   :  { %265 = vmatpush1.msra.mxu0 %v178_v14  ;;  %336 = vmatpush1.msra.mxu1 %v180_v15  ;;  %v172_v23 = vld [vmem:[#allocation6 + $0x150] sm:$0xff]  ;;  %v167_v24 = vld [vmem:[#allocation6 + $0x128] sm:$0xff]  ;;  %v169_v25 = vld [vmem:[#allocation6 + $0x138] sm:$0xff] }
  0x61   :  { %266 = vmatprep.subr.mxu0 %v175_v16  ;;  %337 = vmatprep.subr.mxu1 %v177_v17  ;;  %v166_v26 = vld [vmem:[#allocation6 + $0x120] sm:$0xff]  ;;  %v168_v27 = vld [vmem:[#allocation6 + $0x130] sm:$0xff]  ;;  %v163_v28 = vld [vmem:[#allocation6 + $0x108] sm:$0xff] }
  0x62   :  { %267 = vmatpush1.msra.mxu0 %v174_v18  ;;  %338 = vmatpush1.msra.mxu1 %v176_v19  ;;  %v165_v29 = vld [vmem:[#allocation6 + $0x118] sm:$0xff]  ;;  %v162_v30 = vld [vmem:[#allocation6 + $0x100] sm:$0xff]  ;;  %v164_v31 = vld [vmem:[#allocation6 + $0x110] sm:$0xff] }
  0x63   :  { %268 = vmatprep.subr.mxu0 %v171_v20  ;;  %339 = vmatprep.subr.mxu1 %v173_v21  ;;  %v159_v32 = vld [vmem:[#allocation6 + $0xe8] sm:$0xff]  ;;  %v161_v33 = vld [vmem:[#allocation6 + $0xf8] sm:$0xff]  ;;  %v158_v34 = vld [vmem:[#allocation6 + $0xe0] sm:$0xff] }
  0x64   :  { %269 = vmatpush1.msra.mxu0 %v170_v22  ;;  %340 = vmatpush1.msra.mxu1 %v172_v23  ;;  %v160_v35 = vld [vmem:[#allocation6 + $0xf0] sm:$0xff]  ;;  %v155_v36 = vld [vmem:[#allocation6 + $0xc8] sm:$0xff]  ;;  %v157_v37 = vld [vmem:[#allocation6 + $0xd8] sm:$0xff] }
  0x65   :  { %270 = vmatprep.subr.mxu0 %v167_v24  ;;  %341 = vmatprep.subr.mxu1 %v169_v25  ;;  %v154_v38 = vld [vmem:[#allocation6 + $0xc0] sm:$0xff]  ;;  %v156_v39 = vld [vmem:[#allocation6 + $0xd0] sm:$0xff]  ;;  %v151_v40 = vld [vmem:[#allocation6 + $0xa8] sm:$0xff] }
  0x66   :  { %271 = vmatpush1.msra.mxu0 %v166_v26  ;;  %342 = vmatpush1.msra.mxu1 %v168_v27  ;;  %v153_v41 = vld [vmem:[#allocation6 + $0xb8] sm:$0xff]  ;;  %v150_v42 = vld [vmem:[#allocation6 + $0xa0] sm:$0xff]  ;;  %v152_v43 = vld [vmem:[#allocation6 + $0xb0] sm:$0xff] }
  0x67   :  { %272 = vmatprep.subr.mxu0 %v163_v28  ;;  %343 = vmatprep.subr.mxu1 %v165_v29  ;;  %v147_v44 = vld [vmem:[#allocation6 + $0x88] sm:$0xff]  ;;  %v149_v45 = vld [vmem:[#allocation6 + $0x98] sm:$0xff]  ;;  %v146_v46 = vld [vmem:[#allocation6 + $0x80] sm:$0xff] }
  0x68   :  { %273 = vmatpush1.msra.mxu0 %v162_v30  ;;  %344 = vmatpush1.msra.mxu1 %v164_v31  ;;  %v148_v47 = vld [vmem:[#allocation6 + $0x90] sm:$0xff]  ;;  %v143_v48 = vld [vmem:[#allocation6 + $0x68] sm:$0xff]  ;;  %v145_v49 = vld [vmem:[#allocation6 + $0x78] sm:$0xff] }
  0x69   :  { %274 = vmatprep.subr.mxu0 %v159_v32  ;;  %345 = vmatprep.subr.mxu1 %v161_v33  ;;  %v142_v50 = vld [vmem:[#allocation6 + $0x60] sm:$0xff]  ;;  %v144_v51 = vld [vmem:[#allocation6 + $0x70] sm:$0xff]  ;;  %v139_v52 = vld [vmem:[#allocation6 + $0x48] sm:$0xff] }
  0x6a   :  { %275 = vmatpush1.msra.mxu0 %v158_v34  ;;  %346 = vmatpush1.msra.mxu1 %v160_v35  ;;  %v141_v53 = vld [vmem:[#allocation6 + $0x58] sm:$0xff]  ;;  %v138_v54 = vld [vmem:[#allocation6 + $0x40] sm:$0xff]  ;;  %v140_v55 = vld [vmem:[#allocation6 + $0x50] sm:$0xff] }
  0x6b   :  { %276 = vmatprep.subr.mxu0 %v155_v36  ;;  %347 = vmatprep.subr.mxu1 %v157_v37  ;;  %v135_v56 = vld [vmem:[#allocation6 + $0x28] sm:$0xff]  ;;  %v137_v57 = vld [vmem:[#allocation6 + $0x38] sm:$0xff]  ;;  %v134_v58 = vld [vmem:[#allocation6 + $0x20] sm:$0xff] }
  0x6c   :  { %277 = vmatpush1.msra.mxu0 %v154_v38  ;;  %348 = vmatpush1.msra.mxu1 %v156_v39  ;;  %v136_v59 = vld [vmem:[#allocation6 + $0x30] sm:$0xff]  ;;  %v131_v60 = vld [vmem:[#allocation6 + $0x8] sm:$0xff]  ;;  %v133_v61 = vld [vmem:[#allocation6 + $0x18] sm:$0xff] }
  0x6d   :  { %278 = vmatprep.subr.mxu0 %v151_v40  ;;  %349 = vmatprep.subr.mxu1 %v153_v41  ;;  %v130_v62 = vld [vmem:[#allocation6] sm:$0xff]  ;;  %v132_v63 = vld [vmem:[#allocation6 + $0x10] sm:$0xff]  ;;  %v255_v0 = vld [vmem:[#allocation6 + $0x3e8] sm:$0xff] }
  0x6e   :  { %279 = vmatpush1.msra.mxu0 %v150_v42  ;;  %350 = vmatpush1.msra.mxu1 %v152_v43  ;;  %v257_v1 = vld [vmem:[#allocation6 + $0x3f8] sm:$0xff]  ;;  %v254_v2 = vld [vmem:[#allocation6 + $0x3e0] sm:$0xff]  ;;  %v256_v3 = vld [vmem:[#allocation6 + $0x3f0] sm:$0xff] }
  0x6f   :  { %280 = vmatprep.subr.mxu0 %v147_v44  ;;  %351 = vmatprep.subr.mxu1 %v149_v45  ;;  %v251_v4 = vld [vmem:[#allocation6 + $0x3c8] sm:$0xff]  ;;  %v253_v5 = vld [vmem:[#allocation6 + $0x3d8] sm:$0xff]  ;;  %v250_v6 = vld [vmem:[#allocation6 + $0x3c0] sm:$0xff] }
  0x70   :  { %281 = vmatpush1.msra.mxu0 %v146_v46  ;;  %352 = vmatpush1.msra.mxu1 %v148_v47  ;;  %v252_v7 = vld [vmem:[#allocation6 + $0x3d0] sm:$0xff]  ;;  %v247_v8 = vld [vmem:[#allocation6 + $0x3a8] sm:$0xff]  ;;  %v249_v9 = vld [vmem:[#allocation6 + $0x3b8] sm:$0xff] }
  0x71   :  { %282 = vmatprep.subr.mxu0 %v143_v48  ;;  %353 = vmatprep.subr.mxu1 %v145_v49  ;;  %v246_v10 = vld [vmem:[#allocation6 + $0x3a0] sm:$0xff]  ;;  %v248_v11 = vld [vmem:[#allocation6 + $0x3b0] sm:$0xff]  ;;  %v243_v12 = vld [vmem:[#allocation6 + $0x388] sm:$0xff] }
  0x72   :  { %283 = vmatpush1.msra.mxu0 %v142_v50  ;;  %354 = vmatpush1.msra.mxu1 %v144_v51  ;;  %v245_v13 = vld [vmem:[#allocation6 + $0x398] sm:$0xff]  ;;  %v242_v14 = vld [vmem:[#allocation6 + $0x380] sm:$0xff]  ;;  %v244_v15 = vld [vmem:[#allocation6 + $0x390] sm:$0xff] }
  0x73   :  { %284 = vmatprep.subr.mxu0 %v139_v52  ;;  %355 = vmatprep.subr.mxu1 %v141_v53  ;;  %v239_v16 = vld [vmem:[#allocation6 + $0x368] sm:$0xff]  ;;  %v241_v17 = vld [vmem:[#allocation6 + $0x378] sm:$0xff]  ;;  %v238_v18 = vld [vmem:[#allocation6 + $0x360] sm:$0xff] }
  0x74   :  { %285 = vmatpush1.msra.mxu0 %v138_v54  ;;  %356 = vmatpush1.msra.mxu1 %v140_v55  ;;  %v240_v19 = vld [vmem:[#allocation6 + $0x370] sm:$0xff]  ;;  %v235_v20 = vld [vmem:[#allocation6 + $0x348] sm:$0xff]  ;;  %v237_v21 = vld [vmem:[#allocation6 + $0x358] sm:$0xff] }
  0x75   :  { %286 = vmatprep.subr.mxu0 %v135_v56  ;;  %357 = vmatprep.subr.mxu1 %v137_v57  ;;  %v234_v22 = vld [vmem:[#allocation6 + $0x340] sm:$0xff]  ;;  %v236_v23 = vld [vmem:[#allocation6 + $0x350] sm:$0xff]  ;;  %v231_v24 = vld [vmem:[#allocation6 + $0x328] sm:$0xff] }
  0x76   :  { %287 = vmatpush1.msra.mxu0 %v134_v58  ;;  %358 = vmatpush1.msra.mxu1 %v136_v59  ;;  %v233_v25 = vld [vmem:[#allocation6 + $0x338] sm:$0xff]  ;;  %v230_v26 = vld [vmem:[#allocation6 + $0x320] sm:$0xff]  ;;  %v232_v27 = vld [vmem:[#allocation6 + $0x330] sm:$0xff] }
  0x77   :  { %288 = vmatprep.subr.mxu0 %v131_v60  ;;  %359 = vmatprep.subr.mxu1 %v133_v61  ;;  %v227_v28 = vld [vmem:[#allocation6 + $0x308] sm:$0xff]  ;;  %v229_v29 = vld [vmem:[#allocation6 + $0x318] sm:$0xff]  ;;  %v226_v30 = vld [vmem:[#allocation6 + $0x300] sm:$0xff] }
  0x78   :  { %289 = vmatpush1.msra.mxu0 %v130_v62  ;;  %360 = vmatpush1.msra.mxu1 %v132_v63  ;;  %v228_v31 = vld [vmem:[#allocation6 + $0x310] sm:$0xff]  ;;  %v223_v32 = vld [vmem:[#allocation6 + $0x2e8] sm:$0xff]  ;;  %v225_v33 = vld [vmem:[#allocation6 + $0x2f8] sm:$0xff] }
  0x79   :  { %290 = vmatprep.subr.mxu0 %v255_v0  ;;  %361 = vmatprep.subr.mxu1 %v257_v1  ;;  %v222_v34 = vld [vmem:[#allocation6 + $0x2e0] sm:$0xff]  ;;  %v224_v35 = vld [vmem:[#allocation6 + $0x2f0] sm:$0xff]  ;;  %v219_v36 = vld [vmem:[#allocation6 + $0x2c8] sm:$0xff] }
  0x7a   :  { %291 = vmatpush2.msra.mxu0 %v254_v2  ;;  %362 = vmatpush2.msra.mxu1 %v256_v3  ;;  %v221_v37 = vld [vmem:[#allocation6 + $0x2d8] sm:$0xff]  ;;  %v218_v38 = vld [vmem:[#allocation6 + $0x2c0] sm:$0xff]  ;;  %v220_v39 = vld [vmem:[#allocation6 + $0x2d0] sm:$0xff] }
  0x7b   :  { %292 = vmatprep.subr.mxu0 %v251_v4  ;;  %363 = vmatprep.subr.mxu1 %v253_v5  ;;  %v215_v40 = vld [vmem:[#allocation6 + $0x2a8] sm:$0xff]  ;;  %v217_v41 = vld [vmem:[#allocation6 + $0x2b8] sm:$0xff]  ;;  %v214_v42 = vld [vmem:[#allocation6 + $0x2a0] sm:$0xff] }
  0x7c   :  { %293 = vmatpush2.msra.mxu0 %v250_v6  ;;  %364 = vmatpush2.msra.mxu1 %v252_v7  ;;  %v216_v43 = vld [vmem:[#allocation6 + $0x2b0] sm:$0xff]  ;;  %v211_v44 = vld [vmem:[#allocation6 + $0x288] sm:$0xff]  ;;  %v213_v45 = vld [vmem:[#allocation6 + $0x298] sm:$0xff] }
  0x7d   :  { %294 = vmatprep.subr.mxu0 %v247_v8  ;;  %365 = vmatprep.subr.mxu1 %v249_v9  ;;  %v210_v46 = vld [vmem:[#allocation6 + $0x280] sm:$0xff]  ;;  %v212_v47 = vld [vmem:[#allocation6 + $0x290] sm:$0xff]  ;;  %v207_v48 = vld [vmem:[#allocation6 + $0x268] sm:$0xff] }
  0x7e   :  { %295 = vmatpush2.msra.mxu0 %v246_v10  ;;  %366 = vmatpush2.msra.mxu1 %v248_v11  ;;  %v209_v49 = vld [vmem:[#allocation6 + $0x278] sm:$0xff]  ;;  %v206_v50 = vld [vmem:[#allocation6 + $0x260] sm:$0xff]  ;;  %v208_v51 = vld [vmem:[#allocation6 + $0x270] sm:$0xff] }
  0x7f   :  { %296 = vmatprep.subr.mxu0 %v243_v12  ;;  %367 = vmatprep.subr.mxu1 %v245_v13  ;;  %v203_v52 = vld [vmem:[#allocation6 + $0x248] sm:$0xff]  ;;  %v205_v53 = vld [vmem:[#allocation6 + $0x258] sm:$0xff]  ;;  %v202_v54 = vld [vmem:[#allocation6 + $0x240] sm:$0xff] }
  0x80   :  { %297 = vmatpush2.msra.mxu0 %v242_v14  ;;  %368 = vmatpush2.msra.mxu1 %v244_v15  ;;  %v204_v55 = vld [vmem:[#allocation6 + $0x250] sm:$0xff]  ;;  %v123_v56 = vld [vmem:[#allocation3 + $0x8] sm:$0xff]  ;;  %v199_v57 = vld [vmem:[#allocation6 + $0x228] sm:$0xff] }
  0x81   :  { %298 = vmatprep.subr.mxu0 %v239_v16  ;;  %369 = vmatprep.subr.mxu1 %v241_v17  ;;  %v201_v58 = vld [vmem:[#allocation6 + $0x238] sm:$0xff]  ;;  %v198_v59 = vld [vmem:[#allocation6 + $0x220] sm:$0xff]  ;;  %v200_v60 = vld [vmem:[#allocation6 + $0x230] sm:$0xff]  ;;  %v125_v0 = vmax.f32 %v123_v56, 0.0 }
  0x82   :  { %299 = vmatpush2.msra.mxu0 %v238_v18  ;;  %370 = vmatpush2.msra.mxu1 %v240_v19  ;;  %v122_v61 = vld [vmem:[#allocation3] sm:$0xff]  ;;  %v195_v62 = vld [vmem:[#allocation6 + $0x208] sm:$0xff]  ;;  %v197_v63 = vld [vmem:[#allocation6 + $0x218] sm:$0xff] }
  0x83   :  { %300 = vmatprep.subr.mxu0 %v235_v20  ;;  %371 = vmatprep.subr.mxu1 %v237_v21  ;;  %v194_v1 = vld [vmem:[#allocation6 + $0x200] sm:$0xff]  ;;  %v196_v2 = vld [vmem:[#allocation6 + $0x210] sm:$0xff]  ;;  %v124_v3 = vmax.f32 %v122_v61, 0.0 }
  0x84   :  { %301 = vmatpush2.msra.mxu0 %v234_v22  ;;  %372 = vmatpush2.msra.mxu1 %v236_v23  ;;  %v536_v4 = vld [vmem:[#allocation9 + $0x2d8] sm:$0xff]  ;;  %v535_v6 = vld [vmem:[#allocation9 + $0x2d0] sm:$0xff]  ;;  %v530_v8 = vld [vmem:[#allocation9 + $0x2a8] sm:$0xff] }
  0x85   :  { %302 = vmatprep.subr.mxu0 %v231_v24  ;;  %373 = vmatprep.subr.mxu1 %v233_v25  ;;  %v728_v5 = vld [vmem:[#allocation9 + $0x8d8] sm:$0xff]  ;;  %v727_v7 = vld [vmem:[#allocation9 + $0x8d0] sm:$0xff]  ;;  %v722_v9 = vld [vmem:[#allocation9 + $0x8a8] sm:$0xff] }
  0x86   :  { %303 = vmatpush2.msra.mxu0 %v230_v26  ;;  %374 = vmatpush2.msra.mxu1 %v232_v27  ;;  %v529_v10 = vld [vmem:[#allocation9 + $0x2a0] sm:$0xff]  ;;  %v524_v12 = vld [vmem:[#allocation9 + $0x278] sm:$0xff]  ;;  %v523_v14 = vld [vmem:[#allocation9 + $0x270] sm:$0xff] }
  0x87   :  { %304 = vmatprep.subr.mxu0 %v227_v28  ;;  %375 = vmatprep.subr.mxu1 %v229_v29  ;;  %v721_v11 = vld [vmem:[#allocation9 + $0x8a0] sm:$0xff]  ;;  %v716_v13 = vld [vmem:[#allocation9 + $0x878] sm:$0xff]  ;;  %v715_v15 = vld [vmem:[#allocation9 + $0x870] sm:$0xff] }
  0x88   :  { %305 = vmatpush2.msra.mxu0 %v226_v30  ;;  %376 = vmatpush2.msra.mxu1 %v228_v31  ;;  %v518_v16 = vld [vmem:[#allocation9 + $0x248] sm:$0xff]  ;;  %v517_v18 = vld [vmem:[#allocation9 + $0x240] sm:$0xff]  ;;  %v512_v20 = vld [vmem:[#allocation9 + $0x218] sm:$0xff] }
  0x89   :  { %306 = vmatprep.subr.mxu0 %v223_v32  ;;  %377 = vmatprep.subr.mxu1 %v225_v33  ;;  %v710_v17 = vld [vmem:[#allocation9 + $0x848] sm:$0xff]  ;;  %v709_v19 = vld [vmem:[#allocation9 + $0x840] sm:$0xff]  ;;  %v704_v21 = vld [vmem:[#allocation9 + $0x818] sm:$0xff] }
  0x8a   :  { %307 = vmatpush2.msra.mxu0 %v222_v34  ;;  %378 = vmatpush2.msra.mxu1 %v224_v35  ;;  %v511_v22 = vld [vmem:[#allocation9 + $0x210] sm:$0xff]  ;;  %v506_v24 = vld [vmem:[#allocation9 + $0x1e8] sm:$0xff]  ;;  %v505_v26 = vld [vmem:[#allocation9 + $0x1e0] sm:$0xff] }
  0x8b   :  { %308 = vmatprep.subr.mxu0 %v219_v36  ;;  %379 = vmatprep.subr.mxu1 %v221_v37  ;;  %v703_v23 = vld [vmem:[#allocation9 + $0x810] sm:$0xff]  ;;  %v698_v25 = vld [vmem:[#allocation9 + $0x7e8] sm:$0xff]  ;;  %v697_v27 = vld [vmem:[#allocation9 + $0x7e0] sm:$0xff] }
  0x8c   :  { %309 = vmatpush2.msra.mxu0 %v218_v38  ;;  %380 = vmatpush2.msra.mxu1 %v220_v39  ;;  %v500_v28 = vld [vmem:[#allocation9 + $0x1b8] sm:$0xff]  ;;  %v499_v30 = vld [vmem:[#allocation9 + $0x1b0] sm:$0xff]  ;;  %v494_v32 = vld [vmem:[#allocation9 + $0x188] sm:$0xff] }
  0x8d   :  { %310 = vmatprep.subr.mxu0 %v215_v40  ;;  %381 = vmatprep.subr.mxu1 %v217_v41  ;;  %v692_v29 = vld [vmem:[#allocation9 + $0x7b8] sm:$0xff]  ;;  %v691_v31 = vld [vmem:[#allocation9 + $0x7b0] sm:$0xff]  ;;  %v686_v33 = vld [vmem:[#allocation9 + $0x788] sm:$0xff] }
  0x8e   :  { %311 = vmatpush2.msra.mxu0 %v214_v42  ;;  %382 = vmatpush2.msra.mxu1 %v216_v43  ;;  %v493_v34 = vld [vmem:[#allocation9 + $0x180] sm:$0xff]  ;;  %v488_v36 = vld [vmem:[#allocation9 + $0x158] sm:$0xff]  ;;  %v487_v38 = vld [vmem:[#allocation9 + $0x150] sm:$0xff] }
  0x8f   :  { %312 = vmatprep.subr.mxu0 %v211_v44  ;;  %383 = vmatprep.subr.mxu1 %v213_v45  ;;  %v685_v35 = vld [vmem:[#allocation9 + $0x780] sm:$0xff]  ;;  %v680_v37 = vld [vmem:[#allocation9 + $0x758] sm:$0xff]  ;;  %v679_v39 = vld [vmem:[#allocation9 + $0x750] sm:$0xff] }
  0x90   :  { %313 = vmatpush2.msra.mxu0 %v210_v46  ;;  %384 = vmatpush2.msra.mxu1 %v212_v47  ;;  %v482_v40 = vld [vmem:[#allocation9 + $0x128] sm:$0xff]  ;;  %v481_v42 = vld [vmem:[#allocation9 + $0x120] sm:$0xff]  ;;  %v476_v44 = vld [vmem:[#allocation9 + $0xf8] sm:$0xff] }
  0x91   :  { %314 = vmatprep.subr.mxu0 %v207_v48  ;;  %385 = vmatprep.subr.mxu1 %v209_v49  ;;  %v674_v41 = vld [vmem:[#allocation9 + $0x728] sm:$0xff]  ;;  %v673_v43 = vld [vmem:[#allocation9 + $0x720] sm:$0xff]  ;;  %v668_v45 = vld [vmem:[#allocation9 + $0x6f8] sm:$0xff] }
  0x92   :  { %315 = vmatpush2.msra.mxu0 %v206_v50  ;;  %386 = vmatpush2.msra.mxu1 %v208_v51  ;;  %v475_v46 = vld [vmem:[#allocation9 + $0xf0] sm:$0xff]  ;;  %v470_v48 = vld [vmem:[#allocation9 + $0xc8] sm:$0xff]  ;;  %v469_v50 = vld [vmem:[#allocation9 + $0xc0] sm:$0xff] }
  0x93   :  { %316 = vmatprep.subr.mxu0 %v203_v52  ;;  %387 = vmatprep.subr.mxu1 %v205_v53  ;;  %v667_v47 = vld [vmem:[#allocation9 + $0x6f0] sm:$0xff]  ;;  %v662_v49 = vld [vmem:[#allocation9 + $0x6c8] sm:$0xff]  ;;  %v661_v51 = vld [vmem:[#allocation9 + $0x6c0] sm:$0xff] }
  0x94   :  { %317 = vmatpush2.msra.mxu0 %v202_v54  ;;  %388 = vmatpush2.msra.mxu1 %v204_v55  ;;  %v464_v52 = vld [vmem:[#allocation9 + $0x98] sm:$0xff]  ;;  %v463_v54 = vld [vmem:[#allocation9 + $0x90] sm:$0xff]  ;;  %v458_v56 = vld [vmem:[#allocation9 + $0x68] sm:$0xff] }
  0x95   :  { %318 = vmatprep.subr.mxu0 %v199_v57  ;;  %389 = vmatprep.subr.mxu1 %v201_v58  ;;  %v656_v53 = vld [vmem:[#allocation9 + $0x698] sm:$0xff]  ;;  %v655_v55 = vld [vmem:[#allocation9 + $0x690] sm:$0xff]  ;;  %v650_v57 = vld [vmem:[#allocation9 + $0x668] sm:$0xff] }
  0x96   :  { %319 = vmatpush2.msra.mxu0 %v198_v59  ;;  %390 = vmatpush2.msra.mxu1 %v200_v60  ;;  %v457_v58 = vld [vmem:[#allocation9 + $0x60] sm:$0xff]  ;;  %v452_v60 = vld [vmem:[#allocation9 + $0x38] sm:$0xff] }
  0x97   :  { %320 = vmatprep.subr.mxu0 %v195_v62  ;;  %391 = vmatprep.subr.mxu1 %v197_v63  ;;  %v649_v59 = vld [vmem:[#allocation9 + $0x660] sm:$0xff]  ;;  %v644_v61 = vld [vmem:[#allocation9 + $0x638] sm:$0xff]  ;;  %v451_v62 = vld [vmem:[#allocation9 + $0x30] sm:$0xff] }
  0x98   :  { %321 = vmatpush2.msra.mxu0 %v194_v1  ;;  %322 = vmatprep.mubr.f32.mxu0 %v125_v0  ;;  %v643_v63 = vld [vmem:[#allocation9 + $0x630] sm:$0xff]  ;;  %v638_v1 = vld [vmem:[#allocation9 + $0x608] sm:$0xff] }
  0x99   :  { %392 = vmatpush2.msra.mxu1 %v196_v2  ;;  %393 = vmatprep.mubr.f32.mxu1 %v125_v0  ;;  %v446_v0 = vld [vmem:[#allocation9 + $0x8] sm:$0xff]  ;;  %v445_v2 = vld [vmem:[#allocation9] sm:$0xff] }
  0x9a   :  { %323 = vmatmul.mubr.f32.vlgmr.msra.gmra.mxu0 %v124_v3  ;;  %394 = vmatmul.mubr.f32.vlgmr.msra.gmra.mxu1 %v124_v3  ;;  %v637_v3 = vld [vmem:[#allocation9 + $0x600] sm:$0xff] }
  0x9b   :  { %861 = vmatprep.subr.mxu0 %v536_v4  ;;  %932 = vmatprep.subr.mxu1 %v728_v5  ;;  %v632_v4 = vld [vmem:[#allocation9 + $0x5d8] sm:$0xff] }
  0x9c   :  { %862 = vmatpush1.msra.mxu0 %v535_v6  ;;  %933 = vmatpush1.msra.mxu1 %v727_v7  ;;  %v824_v5 = vld [vmem:[#allocation9 + $0xbd8] sm:$0xff]  ;;  %v631_v6 = vld [vmem:[#allocation9 + $0x5d0] sm:$0xff] }
  0x9d   :  { %863 = vmatprep.subr.mxu0 %v530_v8  ;;  %934 = vmatprep.subr.mxu1 %v722_v9  ;;  %v823_v7 = vld [vmem:[#allocation9 + $0xbd0] sm:$0xff]  ;;  %v626_v8 = vld [vmem:[#allocation9 + $0x5a8] sm:$0xff] }
  0x9e   :  { %864 = vmatpush1.msra.mxu0 %v529_v10  ;;  %935 = vmatpush1.msra.mxu1 %v721_v11  ;;  %v818_v9 = vld [vmem:[#allocation9 + $0xba8] sm:$0xff]  ;;  %v625_v10 = vld [vmem:[#allocation9 + $0x5a0] sm:$0xff] }
  0x9f   :  { %865 = vmatprep.subr.mxu0 %v524_v12  ;;  %936 = vmatprep.subr.mxu1 %v716_v13  ;;  %v817_v11 = vld [vmem:[#allocation9 + $0xba0] sm:$0xff]  ;;  %v620_v12 = vld [vmem:[#allocation9 + $0x578] sm:$0xff] }
  0xa0   :  { %866 = vmatpush1.msra.mxu0 %v523_v14  ;;  %937 = vmatpush1.msra.mxu1 %v715_v15  ;;  %v812_v13 = vld [vmem:[#allocation9 + $0xb78] sm:$0xff]  ;;  %v619_v14 = vld [vmem:[#allocation9 + $0x570] sm:$0xff] }
  0xa1   :  { %867 = vmatprep.subr.mxu0 %v518_v16  ;;  %938 = vmatprep.subr.mxu1 %v710_v17  ;;  %v811_v15 = vld [vmem:[#allocation9 + $0xb70] sm:$0xff]  ;;  %v614_v16 = vld [vmem:[#allocation9 + $0x548] sm:$0xff] }
  0xa2   :  { %868 = vmatpush1.msra.mxu0 %v517_v18  ;;  %939 = vmatpush1.msra.mxu1 %v709_v19  ;;  %v806_v17 = vld [vmem:[#allocation9 + $0xb48] sm:$0xff]  ;;  %v613_v18 = vld [vmem:[#allocation9 + $0x540] sm:$0xff] }
  0xa3   :  { %869 = vmatprep.subr.mxu0 %v512_v20  ;;  %940 = vmatprep.subr.mxu1 %v704_v21  ;;  %v805_v19 = vld [vmem:[#allocation9 + $0xb40] sm:$0xff]  ;;  %v608_v20 = vld [vmem:[#allocation9 + $0x518] sm:$0xff] }
  0xa4   :  { %870 = vmatpush1.msra.mxu0 %v511_v22  ;;  %941 = vmatpush1.msra.mxu1 %v703_v23  ;;  %v800_v21 = vld [vmem:[#allocation9 + $0xb18] sm:$0xff]  ;;  %v607_v22 = vld [vmem:[#allocation9 + $0x510] sm:$0xff] }
  0xa5   :  { %871 = vmatprep.subr.mxu0 %v506_v24  ;;  %942 = vmatprep.subr.mxu1 %v698_v25  ;;  %v799_v23 = vld [vmem:[#allocation9 + $0xb10] sm:$0xff]  ;;  %v602_v24 = vld [vmem:[#allocation9 + $0x4e8] sm:$0xff] }
  0xa6   :  { %872 = vmatpush1.msra.mxu0 %v505_v26  ;;  %943 = vmatpush1.msra.mxu1 %v697_v27  ;;  %v794_v25 = vld [vmem:[#allocation9 + $0xae8] sm:$0xff]  ;;  %v601_v26 = vld [vmem:[#allocation9 + $0x4e0] sm:$0xff] }
  0xa7   :  { %873 = vmatprep.subr.mxu0 %v500_v28  ;;  %944 = vmatprep.subr.mxu1 %v692_v29  ;;  %v793_v27 = vld [vmem:[#allocation9 + $0xae0] sm:$0xff]  ;;  %v596_v28 = vld [vmem:[#allocation9 + $0x4b8] sm:$0xff] }
  0xa8   :  { %874 = vmatpush1.msra.mxu0 %v499_v30  ;;  %945 = vmatpush1.msra.mxu1 %v691_v31  ;;  %v788_v29 = vld [vmem:[#allocation9 + $0xab8] sm:$0xff]  ;;  %v595_v30 = vld [vmem:[#allocation9 + $0x4b0] sm:$0xff] }
  0xa9   :  { %875 = vmatprep.subr.mxu0 %v494_v32  ;;  %946 = vmatprep.subr.mxu1 %v686_v33  ;;  %v787_v31 = vld [vmem:[#allocation9 + $0xab0] sm:$0xff]  ;;  %v590_v32 = vld [vmem:[#allocation9 + $0x488] sm:$0xff] }
  0xaa   :  { %876 = vmatpush1.msra.mxu0 %v493_v34  ;;  %947 = vmatpush1.msra.mxu1 %v685_v35  ;;  %v782_v33 = vld [vmem:[#allocation9 + $0xa88] sm:$0xff]  ;;  %v589_v34 = vld [vmem:[#allocation9 + $0x480] sm:$0xff] }
  0xab   :  { %877 = vmatprep.subr.mxu0 %v488_v36  ;;  %948 = vmatprep.subr.mxu1 %v680_v37  ;;  %v781_v35 = vld [vmem:[#allocation9 + $0xa80] sm:$0xff]  ;;  %v584_v36 = vld [vmem:[#allocation9 + $0x458] sm:$0xff] }
  0xac   :  { %878 = vmatpush1.msra.mxu0 %v487_v38  ;;  %949 = vmatpush1.msra.mxu1 %v679_v39  ;;  %v776_v37 = vld [vmem:[#allocation9 + $0xa58] sm:$0xff]  ;;  %v583_v38 = vld [vmem:[#allocation9 + $0x450] sm:$0xff] }
  0xad   :  { %879 = vmatprep.subr.mxu0 %v482_v40  ;;  %950 = vmatprep.subr.mxu1 %v674_v41  ;;  %v775_v39 = vld [vmem:[#allocation9 + $0xa50] sm:$0xff]  ;;  %v578_v40 = vld [vmem:[#allocation9 + $0x428] sm:$0xff] }
  0xae   :  { %880 = vmatpush1.msra.mxu0 %v481_v42  ;;  %951 = vmatpush1.msra.mxu1 %v673_v43  ;;  %v770_v41 = vld [vmem:[#allocation9 + $0xa28] sm:$0xff]  ;;  %v577_v42 = vld [vmem:[#allocation9 + $0x420] sm:$0xff] }
  0xaf   :  { %881 = vmatprep.subr.mxu0 %v476_v44  ;;  %952 = vmatprep.subr.mxu1 %v668_v45  ;;  %v769_v43 = vld [vmem:[#allocation9 + $0xa20] sm:$0xff]  ;;  %v572_v44 = vld [vmem:[#allocation9 + $0x3f8] sm:$0xff] }
  0xb0   :  { %882 = vmatpush1.msra.mxu0 %v475_v46  ;;  %953 = vmatpush1.msra.mxu1 %v667_v47  ;;  %v764_v45 = vld [vmem:[#allocation9 + $0x9f8] sm:$0xff]  ;;  %v571_v46 = vld [vmem:[#allocation9 + $0x3f0] sm:$0xff] }
  0xb1   :  { %883 = vmatprep.subr.mxu0 %v470_v48  ;;  %954 = vmatprep.subr.mxu1 %v662_v49  ;;  %v763_v47 = vld [vmem:[#allocation9 + $0x9f0] sm:$0xff]  ;;  %v566_v48 = vld [vmem:[#allocation9 + $0x3c8] sm:$0xff] }
  0xb2   :  { %884 = vmatpush1.msra.mxu0 %v469_v50  ;;  %955 = vmatpush1.msra.mxu1 %v661_v51  ;;  %v758_v49 = vld [vmem:[#allocation9 + $0x9c8] sm:$0xff]  ;;  %v565_v50 = vld [vmem:[#allocation9 + $0x3c0] sm:$0xff] }
  0xb3   :  { %885 = vmatprep.subr.mxu0 %v464_v52  ;;  %956 = vmatprep.subr.mxu1 %v656_v53  ;;  %v757_v51 = vld [vmem:[#allocation9 + $0x9c0] sm:$0xff]  ;;  %v560_v52 = vld [vmem:[#allocation9 + $0x398] sm:$0xff] }
  0xb4   :  { %886 = vmatpush1.msra.mxu0 %v463_v54  ;;  %957 = vmatpush1.msra.mxu1 %v655_v55  ;;  %v752_v53 = vld [vmem:[#allocation9 + $0x998] sm:$0xff]  ;;  %v559_v54 = vld [vmem:[#allocation9 + $0x390] sm:$0xff] }
  0xb5   :  { %887 = vmatprep.subr.mxu0 %v458_v56  ;;  %958 = vmatprep.subr.mxu1 %v650_v57  ;;  %v751_v55 = vld [vmem:[#allocation9 + $0x990] sm:$0xff]  ;;  %v554_v56 = vld [vmem:[#allocation9 + $0x368] sm:$0xff] }
  0xb6   :  { %888 = vmatpush1.msra.mxu0 %v457_v58  ;;  %959 = vmatpush1.msra.mxu1 %v649_v59  ;;  %v746_v57 = vld [vmem:[#allocation9 + $0x968] sm:$0xff]  ;;  %v553_v58 = vld [vmem:[#allocation9 + $0x360] sm:$0xff] }
  0xb7   :  { %889 = vmatprep.subr.mxu0 %v452_v60  ;;  %960 = vmatprep.subr.mxu1 %v644_v61  ;;  %v745_v59 = vld [vmem:[#allocation9 + $0x960] sm:$0xff]  ;;  %v548_v60 = vld [vmem:[#allocation9 + $0x338] sm:$0xff] }
  0xb8   :  { %890 = vmatpush1.msra.mxu0 %v451_v62  ;;  %961 = vmatpush1.msra.mxu1 %v643_v63  ;;  %v740_v61 = vld [vmem:[#allocation9 + $0x938] sm:$0xff]  ;;  %v547_v62 = vld [vmem:[#allocation9 + $0x330] sm:$0xff] }
  0xb9   :  { %891 = vmatprep.subr.mxu0 %v446_v0  ;;  %962 = vmatprep.subr.mxu1 %v638_v1  ;;  %v739_v63 = vld [vmem:[#allocation9 + $0x930] sm:$0xff]  ;;  %v542_v0 = vld [vmem:[#allocation9 + $0x308] sm:$0xff] }
  0xba   :  { %892 = vmatpush1.msra.mxu0 %v445_v2  ;;  %963 = vmatpush1.msra.mxu1 %v637_v3  ;;  %v734_v1 = vld [vmem:[#allocation9 + $0x908] sm:$0xff]  ;;  %v541_v2 = vld [vmem:[#allocation9 + $0x300] sm:$0xff] }
  0xbb   :  { %893 = vmatprep.subr.mxu0 %v632_v4  ;;  %964 = vmatprep.subr.mxu1 %v824_v5  ;;  %v733_v3 = vld [vmem:[#allocation9 + $0x900] sm:$0xff]  ;;  %v538_v4 = vld [vmem:[#allocation9 + $0x2e8] sm:$0xff] }
  0xbc   :  { %894 = vmatpush2.msra.mxu0 %v631_v6  ;;  %965 = vmatpush2.msra.mxu1 %v823_v7  ;;  %v730_v5 = vld [vmem:[#allocation9 + $0x8e8] sm:$0xff]  ;;  %v417_v6 = vlaneseq }
  0xbd   :  { %895 = vmatprep.subr.mxu0 %v626_v8  ;;  %966 = vmatprep.subr.mxu1 %v818_v9 }
  0xbe   :  { %896 = vmatpush2.msra.mxu0 %v625_v10  ;;  %967 = vmatpush2.msra.mxu1 %v817_v11  ;;  %v1990_v7 = vshrl.u32 %v417_v6, 7  ;;  %v415_v10 = vld [vmem:[#allocation8] sm:$0xf]  ;;  %v669_v6 = vld [vmem:[#allocation9 + $0x700] sm:$0xff] }
  0xbf   :  { %897 = vmatprep.subr.mxu0 %v620_v12  ;;  %968 = vmatprep.subr.mxu1 %v812_v13 }
  0xc0   :  { %898 = vmatpush2.msra.mxu0 %v619_v14  ;;  %969 = vmatpush2.msra.mxu1 %v811_v15  ;;  %v427_v8 = vsub.s32 2, %v1990_v7  ;;  %v419_v9 = vsub.s32 0, %v1990_v7  ;;  %v423_v11 = vsub.s32 1, %v1990_v7  ;;  %v431_v12 = vsub.s32 3, %v1990_v7 }
  0xc1   :  { %899 = vmatprep.subr.mxu0 %v614_v16  ;;  %970 = vmatprep.subr.mxu1 %v806_v17 }
  0xc2   :  { %900 = vmatpush2.msra.mxu0 %v613_v18  ;;  %971 = vmatpush2.msra.mxu1 %v805_v19  ;;  %v428_v13 = vrot.slane %v415_v10, %v427_v8  ;;  %v420_v14 = vrot.slane %v415_v10, %v419_v9  ;;  %v424_v15 = vrot.slane %v415_v10, %v423_v11 }
  0xc3   :  { %901 = vmatprep.subr.mxu0 %v608_v20  ;;  %972 = vmatprep.subr.mxu1 %v800_v21  ;;  %v432_v16 = vrot.slane %v415_v10, %v431_v12  ;;  %v472_v10 = vld [vmem:[#allocation9 + $0xd8] sm:$0xff] }
  0xc4   :  { %902 = vmatpush2.msra.mxu0 %v607_v22  ;;  %973 = vmatpush2.msra.mxu1 %v799_v23 }
  0xc5   :  { %903 = vmatprep.subr.mxu0 %v602_v24  ;;  %974 = vmatprep.subr.mxu1 %v794_v25 }
  0xc6   :  { %904 = vmatpush2.msra.mxu0 %v601_v26  ;;  %975 = vmatpush2.msra.mxu1 %v793_v27 }
  0xc7   :  { %905 = vmatprep.subr.mxu0 %v596_v28  ;;  %976 = vmatprep.subr.mxu1 %v788_v29  ;;  %v537_v29 = vld [vmem:[#allocation9 + $0x2e0] sm:$0xff] }
  0xc8   :  { %906 = vmatpush2.msra.mxu0 %v595_v30  ;;  %977 = vmatpush2.msra.mxu1 %v787_v31  ;;  %v729_v30 = vld [vmem:[#allocation9 + $0x8e0] sm:$0xff]  ;;  %v532_v31 = vld [vmem:[#allocation9 + $0x2b8] sm:$0xff] }
  0xc9   :  { %907 = vmatprep.subr.mxu0 %v590_v32  ;;  %978 = vmatprep.subr.mxu1 %v782_v33  ;;  %v724_v32 = vld [vmem:[#allocation9 + $0x8b8] sm:$0xff]  ;;  %v531_v33 = vld [vmem:[#allocation9 + $0x2b0] sm:$0xff] }
  0xca   :  { %908 = vmatpush2.msra.mxu0 %v589_v34  ;;  %979 = vmatpush2.msra.mxu1 %v781_v35  ;;  %v723_v34 = vld [vmem:[#allocation9 + $0x8b0] sm:$0xff]  ;;  %v526_v35 = vld [vmem:[#allocation9 + $0x288] sm:$0xff] }
  0xcb   :  { %909 = vmatprep.subr.mxu0 %v584_v36  ;;  %980 = vmatprep.subr.mxu1 %v776_v37  ;;  %v718_v36 = vld [vmem:[#allocation9 + $0x888] sm:$0xff]  ;;  %v525_v37 = vld [vmem:[#allocation9 + $0x280] sm:$0xff] }
  0xcc   :  { %910 = vmatpush2.msra.mxu0 %v583_v38  ;;  %981 = vmatpush2.msra.mxu1 %v775_v39  ;;  %v717_v38 = vld [vmem:[#allocation9 + $0x880] sm:$0xff]  ;;  %v520_v39 = vld [vmem:[#allocation9 + $0x258] sm:$0xff] }
  0xcd   :  { %911 = vmatprep.subr.mxu0 %v578_v40  ;;  %982 = vmatprep.subr.mxu1 %v770_v41  ;;  %v712_v40 = vld [vmem:[#allocation9 + $0x858] sm:$0xff]  ;;  %v519_v41 = vld [vmem:[#allocation9 + $0x250] sm:$0xff] }
  0xce   :  { %912 = vmatpush2.msra.mxu0 %v577_v42  ;;  %983 = vmatpush2.msra.mxu1 %v769_v43  ;;  %v711_v42 = vld [vmem:[#allocation9 + $0x850] sm:$0xff]  ;;  %v514_v43 = vld [vmem:[#allocation9 + $0x228] sm:$0xff] }
  0xcf   :  { %913 = vmatprep.subr.mxu0 %v572_v44  ;;  %984 = vmatprep.subr.mxu1 %v764_v45  ;;  %v706_v44 = vld [vmem:[#allocation9 + $0x828] sm:$0xff]  ;;  %v513_v45 = vld [vmem:[#allocation9 + $0x220] sm:$0xff] }
  0xd0   :  { %914 = vmatpush2.msra.mxu0 %v571_v46  ;;  %985 = vmatpush2.msra.mxu1 %v763_v47  ;;  %v705_v46 = vld [vmem:[#allocation9 + $0x820] sm:$0xff]  ;;  %v508_v47 = vld [vmem:[#allocation9 + $0x1f8] sm:$0xff] }
  0xd1   :  { %915 = vmatprep.subr.mxu0 %v566_v48  ;;  %986 = vmatprep.subr.mxu1 %v758_v49  ;;  %v700_v48 = vld [vmem:[#allocation9 + $0x7f8] sm:$0xff]  ;;  %v507_v49 = vld [vmem:[#allocation9 + $0x1f0] sm:$0xff] }
  0xd2   :  { %916 = vmatpush2.msra.mxu0 %v565_v50  ;;  %987 = vmatpush2.msra.mxu1 %v757_v51  ;;  %v699_v50 = vld [vmem:[#allocation9 + $0x7f0] sm:$0xff]  ;;  %v502_v51 = vld [vmem:[#allocation9 + $0x1c8] sm:$0xff] }
  0xd3   :  { %917 = vmatprep.subr.mxu0 %v560_v52  ;;  %988 = vmatprep.subr.mxu1 %v752_v53  ;;  %v694_v52 = vld [vmem:[#allocation9 + $0x7c8] sm:$0xff]  ;;  %v501_v53 = vld [vmem:[#allocation9 + $0x1c0] sm:$0xff] }
  0xd4   :  { %918 = vmatpush2.msra.mxu0 %v559_v54  ;;  %989 = vmatpush2.msra.mxu1 %v751_v55  ;;  %v693_v54 = vld [vmem:[#allocation9 + $0x7c0] sm:$0xff]  ;;  %v496_v55 = vld [vmem:[#allocation9 + $0x198] sm:$0xff] }
  0xd5   :  { %919 = vmatprep.subr.mxu0 %v554_v56  ;;  %990 = vmatprep.subr.mxu1 %v746_v57  ;;  %v688_v56 = vld [vmem:[#allocation9 + $0x798] sm:$0xff]  ;;  %v495_v57 = vld [vmem:[#allocation9 + $0x190] sm:$0xff] }
  0xd6   :  { %920 = vmatpush2.msra.mxu0 %v553_v58  ;;  %991 = vmatpush2.msra.mxu1 %v745_v59  ;;  %v687_v58 = vld [vmem:[#allocation9 + $0x790] sm:$0xff]  ;;  %v490_v59 = vld [vmem:[#allocation9 + $0x168] sm:$0xff] }
  0xd7   :  { %921 = vmatprep.subr.mxu0 %v548_v60  ;;  %992 = vmatprep.subr.mxu1 %v740_v61  ;;  %v682_v60 = vld [vmem:[#allocation9 + $0x768] sm:$0xff]  ;;  %v489_v61 = vld [vmem:[#allocation9 + $0x160] sm:$0xff] }
  0xd8   :  { %922 = vmatpush2.msra.mxu0 %v547_v62  ;;  %993 = vmatpush2.msra.mxu1 %v739_v63  ;;  %v681_v62 = vld [vmem:[#allocation9 + $0x760] sm:$0xff]  ;;  %v484_v63 = vld [vmem:[#allocation9 + $0x138] sm:$0xff] }
  0xd9   :  { %923 = vmatprep.subr.mxu0 %v542_v0  ;;  %994 = vmatprep.subr.mxu1 %v734_v1  ;;  %v676_v0 = vld [vmem:[#allocation9 + $0x738] sm:$0xff]  ;;  %v483_v1 = vld [vmem:[#allocation9 + $0x130] sm:$0xff] }
  0xda   :  { %924 = vmatpush2.msra.mxu0 %v541_v2  ;;  %995 = vmatpush2.msra.mxu1 %v733_v3  ;;  %v675_v2 = vld [vmem:[#allocation9 + $0x730] sm:$0xff]  ;;  %v478_v3 = vld [vmem:[#allocation9 + $0x108] sm:$0xff] }
  0xdb   :  { %1003 = vmatprep.subr.mxu0 %v538_v4  ;;  %1074 = vmatprep.subr.mxu1 %v730_v5  ;;  %v670_v4 = vld [vmem:[#allocation9 + $0x708] sm:$0xff]  ;;  %v477_v5 = vld [vmem:[#allocation9 + $0x100] sm:$0xff] }
 0x15a   :  { %v324_v17 = vpop.f32.mrf.mxu0  ;;  %v395_v18 = vpop.f32.mrf.mxu1 }
 0x15b   :  { %v439_v19 = vadd.f32 %v428_v13, %v395_v18  ;;  %v437_v20 = vadd.f32 %v420_v14, %v324_v17  ;;  %v664_v13 = vld [vmem:[#allocation9 + $0x6d8] sm:$0xff]  ;;  %v471_v14 = vld [vmem:[#allocation9 + $0xd0] sm:$0xff]  ;;  %v658_v17 = vld [vmem:[#allocation9 + $0x6a8] sm:$0xff] }
 0x15c   :  { %v326_v21 = vpop.f32.mrf.mxu0  ;;  %v397_v22 = vpop.f32.mrf.mxu1  ;;  %v465_v18 = vld [vmem:[#allocation9 + $0xa0] sm:$0xff] }
 0x15d   :  { %v438_v23 = vadd.f32 %v424_v15, %v326_v21  ;;  %v440_v24 = vadd.f32 %v432_v16, %v397_v22  ;;  %v2004_v25 = vmax.f32 %v439_v19, 0.0  ;;  %v2010_v28 = vmax.f32 %v437_v20, 0.0  ;;  %v663_v15 = vld [vmem:[#allocation9 + $0x6d0] sm:$0xff]  ;;  %v466_v16 = vld [vmem:[#allocation9 + $0xa8] sm:$0xff]  ;;  %v657_v19 = vld [vmem:[#allocation9 + $0x6a0] sm:$0xff] }
 0x15e   :  { %v460_v20 = vld [vmem:[#allocation9 + $0x78] sm:$0xff]  ;;  %v459_v22 = vld [vmem:[#allocation9 + $0x70] sm:$0xff] }
 0x15f   :  { %v2006_v26 = vmax.f32 %v438_v23, 0.0  ;;  %v2008_v27 = vmax.f32 %v440_v24, 0.0  ;;  %v652_v21 = vld [vmem:[#allocation9 + $0x678] sm:$0xff]  ;;  %v651_v23 = vld [vmem:[#allocation9 + $0x670] sm:$0xff]  ;;  %v454_v24 = vld [vmem:[#allocation9 + $0x48] sm:$0xff] }
 0x161   :  { %925 = vmatprep.mubr.f32.mxu0 %v2006_v26  ;;  %996 = vmatprep.mubr.f32.mxu1 %v2008_v27 }
 0x162   :  { %926 = vmatmul.mubr.f32.vlgmr.msra.gmra.mxu0 %v2010_v28  ;;  %997 = vmatmul.mubr.f32.vlgmr.msra.gmra.mxu1 %v2004_v25 }
 0x163   :  { %1004 = vmatpush1.msra.mxu0 %v537_v29  ;;  %1075 = vmatpush1.msra.mxu1 %v729_v30  ;;  %v646_v29 = vld [vmem:[#allocation9 + $0x648] sm:$0xff]  ;;  %v453_v30 = vld [vmem:[#allocation9 + $0x40] sm:$0xff] }
 0x164   :  { %1005 = vmatprep.subr.mxu0 %v532_v31  ;;  %1067 = vmatprep.mubr.f32.mxu0 %v2006_v26  ;;  %v645_v31 = vld [vmem:[#allocation9 + $0x640] sm:$0xff] }
 0x165   :  { %1076 = vmatprep.subr.mxu1 %v724_v32  ;;  %1138 = vmatprep.mubr.f32.mxu1 %v2008_v27  ;;  %v448_v32 = vld [vmem:[#allocation9 + $0x18] sm:$0xff] }
 0x166   :  { %1006 = vmatpush1.msra.mxu0 %v531_v33  ;;  %1077 = vmatpush1.msra.mxu1 %v723_v34  ;;  %v640_v33 = vld [vmem:[#allocation9 + $0x618] sm:$0xff]  ;;  %v447_v34 = vld [vmem:[#allocation9 + $0x10] sm:$0xff] }
 0x167   :  { %1007 = vmatprep.subr.mxu0 %v526_v35  ;;  %1078 = vmatprep.subr.mxu1 %v718_v36  ;;  %v639_v35 = vld [vmem:[#allocation9 + $0x610] sm:$0xff]  ;;  %v634_v36 = vld [vmem:[#allocation9 + $0x5e8] sm:$0xff] }
 0x168   :  { %1008 = vmatpush1.msra.mxu0 %v525_v37  ;;  %1079 = vmatpush1.msra.mxu1 %v717_v38  ;;  %v826_v37 = vld [vmem:[#allocation9 + $0xbe8] sm:$0xff]  ;;  %v633_v38 = vld [vmem:[#allocation9 + $0x5e0] sm:$0xff] }
 0x169   :  { %1009 = vmatprep.subr.mxu0 %v520_v39  ;;  %1080 = vmatprep.subr.mxu1 %v712_v40  ;;  %v825_v39 = vld [vmem:[#allocation9 + $0xbe0] sm:$0xff]  ;;  %v628_v40 = vld [vmem:[#allocation9 + $0x5b8] sm:$0xff] }
 0x16a   :  { %1010 = vmatpush1.msra.mxu0 %v519_v41  ;;  %1081 = vmatpush1.msra.mxu1 %v711_v42  ;;  %v820_v41 = vld [vmem:[#allocation9 + $0xbb8] sm:$0xff]  ;;  %v627_v42 = vld [vmem:[#allocation9 + $0x5b0] sm:$0xff] }
 0x16b   :  { %1011 = vmatprep.subr.mxu0 %v514_v43  ;;  %1082 = vmatprep.subr.mxu1 %v706_v44  ;;  %v819_v43 = vld [vmem:[#allocation9 + $0xbb0] sm:$0xff]  ;;  %v622_v44 = vld [vmem:[#allocation9 + $0x588] sm:$0xff] }
 0x16c   :  { %1012 = vmatpush1.msra.mxu0 %v513_v45  ;;  %1083 = vmatpush1.msra.mxu1 %v705_v46  ;;  %v814_v45 = vld [vmem:[#allocation9 + $0xb88] sm:$0xff]  ;;  %v621_v46 = vld [vmem:[#allocation9 + $0x580] sm:$0xff] }
 0x16d   :  { %1013 = vmatprep.subr.mxu0 %v508_v47  ;;  %1084 = vmatprep.subr.mxu1 %v700_v48  ;;  %v813_v47 = vld [vmem:[#allocation9 + $0xb80] sm:$0xff]  ;;  %v616_v48 = vld [vmem:[#allocation9 + $0x558] sm:$0xff] }
 0x16e   :  { %1014 = vmatpush1.msra.mxu0 %v507_v49  ;;  %1085 = vmatpush1.msra.mxu1 %v699_v50  ;;  %v808_v49 = vld [vmem:[#allocation9 + $0xb58] sm:$0xff]  ;;  %v615_v50 = vld [vmem:[#allocation9 + $0x550] sm:$0xff] }
 0x16f   :  { %1015 = vmatprep.subr.mxu0 %v502_v51  ;;  %1086 = vmatprep.subr.mxu1 %v694_v52  ;;  %v807_v51 = vld [vmem:[#allocation9 + $0xb50] sm:$0xff]  ;;  %v610_v52 = vld [vmem:[#allocation9 + $0x528] sm:$0xff] }
 0x170   :  { %1016 = vmatpush1.msra.mxu0 %v501_v53  ;;  %1087 = vmatpush1.msra.mxu1 %v693_v54  ;;  %v802_v53 = vld [vmem:[#allocation9 + $0xb28] sm:$0xff]  ;;  %v609_v54 = vld [vmem:[#allocation9 + $0x520] sm:$0xff] }
 0x171   :  { %1017 = vmatprep.subr.mxu0 %v496_v55  ;;  %1088 = vmatprep.subr.mxu1 %v688_v56  ;;  %v801_v55 = vld [vmem:[#allocation9 + $0xb20] sm:$0xff]  ;;  %v604_v56 = vld [vmem:[#allocation9 + $0x4f8] sm:$0xff] }
 0x172   :  { %1018 = vmatpush1.msra.mxu0 %v495_v57  ;;  %1089 = vmatpush1.msra.mxu1 %v687_v58  ;;  %v796_v57 = vld [vmem:[#allocation9 + $0xaf8] sm:$0xff]  ;;  %v603_v58 = vld [vmem:[#allocation9 + $0x4f0] sm:$0xff] }
 0x173   :  { %1019 = vmatprep.subr.mxu0 %v490_v59  ;;  %1090 = vmatprep.subr.mxu1 %v682_v60  ;;  %v795_v59 = vld [vmem:[#allocation9 + $0xaf0] sm:$0xff]  ;;  %v598_v60 = vld [vmem:[#allocation9 + $0x4c8] sm:$0xff] }
 0x174   :  { %1020 = vmatpush1.msra.mxu0 %v489_v61  ;;  %1091 = vmatpush1.msra.mxu1 %v681_v62  ;;  %v790_v61 = vld [vmem:[#allocation9 + $0xac8] sm:$0xff]  ;;  %v597_v62 = vld [vmem:[#allocation9 + $0x4c0] sm:$0xff] }
 0x175   :  { %1021 = vmatprep.subr.mxu0 %v484_v63  ;;  %1092 = vmatprep.subr.mxu1 %v676_v0  ;;  %v789_v63 = vld [vmem:[#allocation9 + $0xac0] sm:$0xff]  ;;  %v592_v0 = vld [vmem:[#allocation9 + $0x498] sm:$0xff] }
 0x176   :  { %1022 = vmatpush1.msra.mxu0 %v483_v1  ;;  %1093 = vmatpush1.msra.mxu1 %v675_v2  ;;  %v784_v1 = vld [vmem:[#allocation9 + $0xa98] sm:$0xff]  ;;  %v591_v2 = vld [vmem:[#allocation9 + $0x490] sm:$0xff] }
 0x177   :  { %1023 = vmatprep.subr.mxu0 %v478_v3  ;;  %1094 = vmatprep.subr.mxu1 %v670_v4  ;;  %v783_v3 = vld [vmem:[#allocation9 + $0xa90] sm:$0xff]  ;;  %v586_v4 = vld [vmem:[#allocation9 + $0x468] sm:$0xff] }
 0x178   :  { %1024 = vmatpush1.msra.mxu0 %v477_v5  ;;  %1095 = vmatpush1.msra.mxu1 %v669_v6  ;;  %v778_v5 = vld [vmem:[#allocation9 + $0xa68] sm:$0xff]  ;;  %v585_v6 = vld [vmem:[#allocation9 + $0x460] sm:$0xff] }
 0x179   :  { %1025 = vmatprep.subr.mxu0 %v472_v10  ;;  %1096 = vmatprep.subr.mxu1 %v664_v13  ;;  %v777_v10 = vld [vmem:[#allocation9 + $0xa60] sm:$0xff]  ;;  %v580_v13 = vld [vmem:[#allocation9 + $0x438] sm:$0xff] }
 0x17a   :  { %1026 = vmatpush1.msra.mxu0 %v471_v14  ;;  %1097 = vmatpush1.msra.mxu1 %v663_v15  ;;  %v772_v14 = vld [vmem:[#allocation9 + $0xa38] sm:$0xff]  ;;  %v579_v15 = vld [vmem:[#allocation9 + $0x430] sm:$0xff] }
 0x17b   :  { %1027 = vmatprep.subr.mxu0 %v466_v16  ;;  %1098 = vmatprep.subr.mxu1 %v658_v17  ;;  %v771_v16 = vld [vmem:[#allocation9 + $0xa30] sm:$0xff]  ;;  %v574_v17 = vld [vmem:[#allocation9 + $0x408] sm:$0xff] }
 0x17c   :  { %1028 = vmatpush1.msra.mxu0 %v465_v18  ;;  %1099 = vmatpush1.msra.mxu1 %v657_v19  ;;  %v766_v18 = vld [vmem:[#allocation9 + $0xa08] sm:$0xff]  ;;  %v573_v19 = vld [vmem:[#allocation9 + $0x400] sm:$0xff] }
 0x17d   :  { %1029 = vmatprep.subr.mxu0 %v460_v20  ;;  %1100 = vmatprep.subr.mxu1 %v652_v21  ;;  %v765_v20 = vld [vmem:[#allocation9 + $0xa00] sm:$0xff]  ;;  %v568_v21 = vld [vmem:[#allocation9 + $0x3d8] sm:$0xff] }
 0x17e   :  { %1030 = vmatpush1.msra.mxu0 %v459_v22  ;;  %1101 = vmatpush1.msra.mxu1 %v651_v23  ;;  %v760_v22 = vld [vmem:[#allocation9 + $0x9d8] sm:$0xff]  ;;  %v567_v23 = vld [vmem:[#allocation9 + $0x3d0] sm:$0xff] }
 0x17f   :  { %1031 = vmatprep.subr.mxu0 %v454_v24  ;;  %1102 = vmatprep.subr.mxu1 %v646_v29  ;;  %v759_v24 = vld [vmem:[#allocation9 + $0x9d0] sm:$0xff]  ;;  %v562_v29 = vld [vmem:[#allocation9 + $0x3a8] sm:$0xff] }
 0x180   :  { %1032 = vmatpush1.msra.mxu0 %v453_v30  ;;  %1103 = vmatpush1.msra.mxu1 %v645_v31  ;;  %v754_v30 = vld [vmem:[#allocation9 + $0x9a8] sm:$0xff]  ;;  %v561_v31 = vld [vmem:[#allocation9 + $0x3a0] sm:$0xff] }
 0x181   :  { %1033 = vmatprep.subr.mxu0 %v448_v32  ;;  %1104 = vmatprep.subr.mxu1 %v640_v33  ;;  %v753_v32 = vld [vmem:[#allocation9 + $0x9a0] sm:$0xff]  ;;  %v556_v33 = vld [vmem:[#allocation9 + $0x378] sm:$0xff] }
 0x182   :  { %1034 = vmatpush1.msra.mxu0 %v447_v34  ;;  %1105 = vmatpush1.msra.mxu1 %v639_v35  ;;  %v748_v34 = vld [vmem:[#allocation9 + $0x978] sm:$0xff]  ;;  %v555_v35 = vld [vmem:[#allocation9 + $0x370] sm:$0xff] }
 0x183   :  { %1035 = vmatprep.subr.mxu0 %v634_v36  ;;  %1106 = vmatprep.subr.mxu1 %v826_v37  ;;  %v747_v36 = vld [vmem:[#allocation9 + $0x970] sm:$0xff]  ;;  %v550_v37 = vld [vmem:[#allocation9 + $0x348] sm:$0xff] }
 0x184   :  { %1036 = vmatpush2.msra.mxu0 %v633_v38  ;;  %1107 = vmatpush2.msra.mxu1 %v825_v39  ;;  %v742_v38 = vld [vmem:[#allocation9 + $0x948] sm:$0xff]  ;;  %v549_v39 = vld [vmem:[#allocation9 + $0x340] sm:$0xff] }
 0x185   :  { %1037 = vmatprep.subr.mxu0 %v628_v40  ;;  %1108 = vmatprep.subr.mxu1 %v820_v41  ;;  %v741_v40 = vld [vmem:[#allocation9 + $0x940] sm:$0xff]  ;;  %v544_v41 = vld [vmem:[#allocation9 + $0x318] sm:$0xff] }
 0x186   :  { %1038 = vmatpush2.msra.mxu0 %v627_v42  ;;  %1109 = vmatpush2.msra.mxu1 %v819_v43  ;;  %v736_v42 = vld [vmem:[#allocation9 + $0x918] sm:$0xff]  ;;  %v543_v43 = vld [vmem:[#allocation9 + $0x310] sm:$0xff] }
 0x187   :  { %1039 = vmatprep.subr.mxu0 %v622_v44  ;;  %1110 = vmatprep.subr.mxu1 %v814_v45  ;;  %v735_v44 = vld [vmem:[#allocation9 + $0x910] sm:$0xff]  ;;  %v540_v45 = vld [vmem:[#allocation9 + $0x2f8] sm:$0xff] }
 0x188   :  { %1040 = vmatpush2.msra.mxu0 %v621_v46  ;;  %1111 = vmatpush2.msra.mxu1 %v813_v47  ;;  %v732_v46 = vld [vmem:[#allocation9 + $0x8f8] sm:$0xff]  ;;  %v539_v47 = vld [vmem:[#allocation9 + $0x2f0] sm:$0xff] }
 0x189   :  { %1041 = vmatprep.subr.mxu0 %v616_v48  ;;  %1112 = vmatprep.subr.mxu1 %v808_v49  ;;  %v731_v48 = vld [vmem:[#allocation9 + $0x8f0] sm:$0xff]  ;;  %v534_v49 = vld [vmem:[#allocation9 + $0x2c8] sm:$0xff] }
 0x18a   :  { %1042 = vmatpush2.msra.mxu0 %v615_v50  ;;  %1113 = vmatpush2.msra.mxu1 %v807_v51  ;;  %v726_v50 = vld [vmem:[#allocation9 + $0x8c8] sm:$0xff]  ;;  %v533_v51 = vld [vmem:[#allocation9 + $0x2c0] sm:$0xff] }
 0x18b   :  { %1043 = vmatprep.subr.mxu0 %v610_v52  ;;  %1114 = vmatprep.subr.mxu1 %v802_v53  ;;  %v725_v52 = vld [vmem:[#allocation9 + $0x8c0] sm:$0xff]  ;;  %v528_v53 = vld [vmem:[#allocation9 + $0x298] sm:$0xff] }
 0x18c   :  { %1044 = vmatpush2.msra.mxu0 %v609_v54  ;;  %1115 = vmatpush2.msra.mxu1 %v801_v55  ;;  %v720_v54 = vld [vmem:[#allocation9 + $0x898] sm:$0xff]  ;;  %v527_v55 = vld [vmem:[#allocation9 + $0x290] sm:$0xff] }
 0x18d   :  { %1045 = vmatprep.subr.mxu0 %v604_v56  ;;  %1116 = vmatprep.subr.mxu1 %v796_v57  ;;  %v719_v56 = vld [vmem:[#allocation9 + $0x890] sm:$0xff]  ;;  %v522_v57 = vld [vmem:[#allocation9 + $0x268] sm:$0xff] }
 0x18e   :  { %1046 = vmatpush2.msra.mxu0 %v603_v58  ;;  %1117 = vmatpush2.msra.mxu1 %v795_v59  ;;  %v714_v58 = vld [vmem:[#allocation9 + $0x868] sm:$0xff]  ;;  %v521_v59 = vld [vmem:[#allocation9 + $0x260] sm:$0xff] }
 0x18f   :  { %1047 = vmatprep.subr.mxu0 %v598_v60  ;;  %1118 = vmatprep.subr.mxu1 %v790_v61  ;;  %v713_v60 = vld [vmem:[#allocation9 + $0x860] sm:$0xff]  ;;  %v708_v61 = vld [vmem:[#allocation9 + $0x838] sm:$0xff] }
 0x190   :  { %1048 = vmatpush2.msra.mxu0 %v597_v62  ;;  %1119 = vmatpush2.msra.mxu1 %v789_v63  ;;  %v707_v62 = vld [vmem:[#allocation9 + $0x830] sm:$0xff]  ;;  %v510_v63 = vld [vmem:[#allocation9 + $0x208] sm:$0xff] }
 0x191   :  { %1049 = vmatprep.subr.mxu0 %v592_v0  ;;  %1120 = vmatprep.subr.mxu1 %v784_v1  ;;  %v702_v0 = vld [vmem:[#allocation9 + $0x808] sm:$0xff]  ;;  %v509_v1 = vld [vmem:[#allocation9 + $0x200] sm:$0xff] }
 0x192   :  { %1050 = vmatpush2.msra.mxu0 %v591_v2  ;;  %1121 = vmatpush2.msra.mxu1 %v783_v3  ;;  %v701_v2 = vld [vmem:[#allocation9 + $0x800] sm:$0xff]  ;;  %v504_v3 = vld [vmem:[#allocation9 + $0x1d8] sm:$0xff] }
 0x193   :  { %1051 = vmatprep.subr.mxu0 %v586_v4  ;;  %1122 = vmatprep.subr.mxu1 %v778_v5  ;;  %v696_v4 = vld [vmem:[#allocation9 + $0x7d8] sm:$0xff]  ;;  %v503_v5 = vld [vmem:[#allocation9 + $0x1d0] sm:$0xff] }
 0x194   :  { %1052 = vmatpush2.msra.mxu0 %v585_v6  ;;  %1123 = vmatpush2.msra.mxu1 %v777_v10  ;;  %v695_v6 = vld [vmem:[#allocation9 + $0x7d0] sm:$0xff]  ;;  %v498_v10 = vld [vmem:[#allocation9 + $0x1a8] sm:$0xff] }
 0x195   :  { %1053 = vmatprep.subr.mxu0 %v580_v13  ;;  %1124 = vmatprep.subr.mxu1 %v772_v14  ;;  %v690_v13 = vld [vmem:[#allocation9 + $0x7a8] sm:$0xff]  ;;  %v497_v14 = vld [vmem:[#allocation9 + $0x1a0] sm:$0xff] }
 0x196   :  { %1054 = vmatpush2.msra.mxu0 %v579_v15  ;;  %1125 = vmatpush2.msra.mxu1 %v771_v16  ;;  %v689_v15 = vld [vmem:[#allocation9 + $0x7a0] sm:$0xff]  ;;  %v492_v16 = vld [vmem:[#allocation9 + $0x178] sm:$0xff] }
 0x197   :  { %1055 = vmatprep.subr.mxu0 %v574_v17  ;;  %1126 = vmatprep.subr.mxu1 %v766_v18  ;;  %v684_v17 = vld [vmem:[#allocation9 + $0x778] sm:$0xff]  ;;  %v491_v18 = vld [vmem:[#allocation9 + $0x170] sm:$0xff] }
 0x198   :  { %1056 = vmatpush2.msra.mxu0 %v573_v19  ;;  %1127 = vmatpush2.msra.mxu1 %v765_v20  ;;  %v683_v19 = vld [vmem:[#allocation9 + $0x770] sm:$0xff]  ;;  %v486_v20 = vld [vmem:[#allocation9 + $0x148] sm:$0xff] }
 0x199   :  { %1057 = vmatprep.subr.mxu0 %v568_v21  ;;  %1128 = vmatprep.subr.mxu1 %v760_v22  ;;  %v678_v21 = vld [vmem:[#allocation9 + $0x748] sm:$0xff]  ;;  %v485_v22 = vld [vmem:[#allocation9 + $0x140] sm:$0xff] }
 0x19a   :  { %1058 = vmatpush2.msra.mxu0 %v567_v23  ;;  %1129 = vmatpush2.msra.mxu1 %v759_v24  ;;  %v677_v23 = vld [vmem:[#allocation9 + $0x740] sm:$0xff]  ;;  %v480_v24 = vld [vmem:[#allocation9 + $0x118] sm:$0xff] }
 0x19b   :  { %1059 = vmatprep.subr.mxu0 %v562_v29  ;;  %1130 = vmatprep.subr.mxu1 %v754_v30  ;;  %v672_v29 = vld [vmem:[#allocation9 + $0x718] sm:$0xff]  ;;  %v479_v30 = vld [vmem:[#allocation9 + $0x110] sm:$0xff] }
 0x19c   :  { %1060 = vmatpush2.msra.mxu0 %v561_v31  ;;  %1131 = vmatpush2.msra.mxu1 %v753_v32  ;;  %v671_v31 = vld [vmem:[#allocation9 + $0x710] sm:$0xff]  ;;  %v474_v32 = vld [vmem:[#allocation9 + $0xe8] sm:$0xff] }
 0x19d   :  { %1061 = vmatprep.subr.mxu0 %v556_v33  ;;  %1132 = vmatprep.subr.mxu1 %v748_v34  ;;  %v666_v33 = vld [vmem:[#allocation9 + $0x6e8] sm:$0xff]  ;;  %v473_v34 = vld [vmem:[#allocation9 + $0xe0] sm:$0xff] }
 0x19e   :  { %1062 = vmatpush2.msra.mxu0 %v555_v35  ;;  %1133 = vmatpush2.msra.mxu1 %v747_v36  ;;  %v665_v35 = vld [vmem:[#allocation9 + $0x6e0] sm:$0xff]  ;;  %v468_v36 = vld [vmem:[#allocation9 + $0xb8] sm:$0xff] }
 0x19f   :  { %1063 = vmatprep.subr.mxu0 %v550_v37  ;;  %1134 = vmatprep.subr.mxu1 %v742_v38  ;;  %v660_v37 = vld [vmem:[#allocation9 + $0x6b8] sm:$0xff]  ;;  %v467_v38 = vld [vmem:[#allocation9 + $0xb0] sm:$0xff] }
 0x1a0   :  { %1064 = vmatpush2.msra.mxu0 %v549_v39  ;;  %1135 = vmatpush2.msra.mxu1 %v741_v40  ;;  %v659_v39 = vld [vmem:[#allocation9 + $0x6b0] sm:$0xff]  ;;  %v462_v40 = vld [vmem:[#allocation9 + $0x88] sm:$0xff] }
 0x1a1   :  { %1065 = vmatprep.subr.mxu0 %v544_v41  ;;  %1136 = vmatprep.subr.mxu1 %v736_v42  ;;  %v654_v41 = vld [vmem:[#allocation9 + $0x688] sm:$0xff]  ;;  %v461_v42 = vld [vmem:[#allocation9 + $0x80] sm:$0xff] }
 0x1a2   :  { %1066 = vmatpush2.msra.mxu0 %v543_v43  ;;  %1137 = vmatpush2.msra.mxu1 %v735_v44  ;;  %v653_v43 = vld [vmem:[#allocation9 + $0x680] sm:$0xff]  ;;  %v456_v44 = vld [vmem:[#allocation9 + $0x58] sm:$0xff] }
 0x1a3   :  { %1068 = vmatmul.mubr.f32.vlgmr.msra.gmra.mxu0 %v2010_v28  ;;  %1139 = vmatmul.mubr.f32.vlgmr.msra.gmra.mxu1 %v2004_v25 }
 0x1a4   :  { %1145 = vmatprep.subr.mxu0 %v540_v45  ;;  %1216 = vmatprep.subr.mxu1 %v732_v46  ;;  %v648_v45 = vld [vmem:[#allocation9 + $0x658] sm:$0xff]  ;;  %v455_v46 = vld [vmem:[#allocation9 + $0x50] sm:$0xff] }
 0x1a5   :  { %1146 = vmatpush1.msra.mxu0 %v539_v47  ;;  %1209 = vmatprep.mubr.f32.mxu0 %v2006_v26  ;;  %v516_v26 = vld [vmem:[#allocation9 + $0x238] sm:$0xff]  ;;  %v647_v47 = vld [vmem:[#allocation9 + $0x650] sm:$0xff] }
 0x1a6   :  { %1217 = vmatpush1.msra.mxu1 %v731_v48  ;;  %1280 = vmatprep.mubr.f32.mxu1 %v2008_v27  ;;  %v515_v27 = vld [vmem:[#allocation9 + $0x230] sm:$0xff]  ;;  %v450_v48 = vld [vmem:[#allocation9 + $0x28] sm:$0xff] }
 0x1a7   :  { %1147 = vmatprep.subr.mxu0 %v534_v49  ;;  %1218 = vmatprep.subr.mxu1 %v726_v50  ;;  %v642_v49 = vld [vmem:[#allocation9 + $0x628] sm:$0xff]  ;;  %v449_v50 = vld [vmem:[#allocation9 + $0x20] sm:$0xff] }
 0x1a8   :  { %1148 = vmatpush1.msra.mxu0 %v533_v51  ;;  %1219 = vmatpush1.msra.mxu1 %v725_v52  ;;  %v641_v51 = vld [vmem:[#allocation9 + $0x620] sm:$0xff]  ;;  %v636_v52 = vld [vmem:[#allocation9 + $0x5f8] sm:$0xff] }
 0x1a9   :  { %1149 = vmatprep.subr.mxu0 %v528_v53  ;;  %1220 = vmatprep.subr.mxu1 %v720_v54  ;;  %v828_v53 = vld [vmem:[#allocation9 + $0xbf8] sm:$0xff]  ;;  %v635_v54 = vld [vmem:[#allocation9 + $0x5f0] sm:$0xff] }
 0x1aa   :  { %1150 = vmatpush1.msra.mxu0 %v527_v55  ;;  %1221 = vmatpush1.msra.mxu1 %v719_v56  ;;  %v827_v55 = vld [vmem:[#allocation9 + $0xbf0] sm:$0xff]  ;;  %v630_v56 = vld [vmem:[#allocation9 + $0x5c8] sm:$0xff] }
 0x1ab   :  { %1151 = vmatprep.subr.mxu0 %v522_v57  ;;  %1222 = vmatprep.subr.mxu1 %v714_v58  ;;  %v822_v57 = vld [vmem:[#allocation9 + $0xbc8] sm:$0xff]  ;;  %v629_v58 = vld [vmem:[#allocation9 + $0x5c0] sm:$0xff] }
 0x1ac   :  { %1152 = vmatpush1.msra.mxu0 %v521_v59  ;;  %1223 = vmatpush1.msra.mxu1 %v713_v60  ;;  %v821_v59 = vld [vmem:[#allocation9 + $0xbc0] sm:$0xff]  ;;  %v624_v60 = vld [vmem:[#allocation9 + $0x598] sm:$0xff] }
 0x1ad   :  { %1153 = vmatprep.subr.mxu0 %v516_v26  ;;  %1224 = vmatprep.subr.mxu1 %v708_v61  ;;  %v816_v26 = vld [vmem:[#allocation9 + $0xb98] sm:$0xff]  ;;  %v623_v61 = vld [vmem:[#allocation9 + $0x590] sm:$0xff] }
 0x1ae   :  { %1154 = vmatpush1.msra.mxu0 %v515_v27  ;;  %1225 = vmatpush1.msra.mxu1 %v707_v62  ;;  %v815_v27 = vld [vmem:[#allocation9 + $0xb90] sm:$0xff]  ;;  %v618_v62 = vld [vmem:[#allocation9 + $0x568] sm:$0xff] }
 0x1af   :  { %1155 = vmatprep.subr.mxu0 %v510_v63  ;;  %1226 = vmatprep.subr.mxu1 %v702_v0  ;;  %v810_v63 = vld [vmem:[#allocation9 + $0xb68] sm:$0xff]  ;;  %v617_v0 = vld [vmem:[#allocation9 + $0x560] sm:$0xff] }
 0x1b0   :  { %1156 = vmatpush1.msra.mxu0 %v509_v1  ;;  %1227 = vmatpush1.msra.mxu1 %v701_v2  ;;  %v809_v1 = vld [vmem:[#allocation9 + $0xb60] sm:$0xff]  ;;  %v612_v2 = vld [vmem:[#allocation9 + $0x538] sm:$0xff] }
 0x1b1   :  { %1157 = vmatprep.subr.mxu0 %v504_v3  ;;  %1228 = vmatprep.subr.mxu1 %v696_v4  ;;  %v804_v3 = vld [vmem:[#allocation9 + $0xb38] sm:$0xff]  ;;  %v611_v4 = vld [vmem:[#allocation9 + $0x530] sm:$0xff] }
 0x1b2   :  { %1158 = vmatpush1.msra.mxu0 %v503_v5  ;;  %1229 = vmatpush1.msra.mxu1 %v695_v6  ;;  %v803_v5 = vld [vmem:[#allocation9 + $0xb30] sm:$0xff]  ;;  %v606_v6 = vld [vmem:[#allocation9 + $0x508] sm:$0xff] }
 0x1b3   :  { %1159 = vmatprep.subr.mxu0 %v498_v10  ;;  %1230 = vmatprep.subr.mxu1 %v690_v13  ;;  %v798_v10 = vld [vmem:[#allocation9 + $0xb08] sm:$0xff]  ;;  %v605_v13 = vld [vmem:[#allocation9 + $0x500] sm:$0xff] }
 0x1b4   :  { %1160 = vmatpush1.msra.mxu0 %v497_v14  ;;  %1231 = vmatpush1.msra.mxu1 %v689_v15  ;;  %v797_v14 = vld [vmem:[#allocation9 + $0xb00] sm:$0xff]  ;;  %v600_v15 = vld [vmem:[#allocation9 + $0x4d8] sm:$0xff] }
 0x1b5   :  { %1161 = vmatprep.subr.mxu0 %v492_v16  ;;  %1232 = vmatprep.subr.mxu1 %v684_v17  ;;  %v792_v16 = vld [vmem:[#allocation9 + $0xad8] sm:$0xff]  ;;  %v599_v17 = vld [vmem:[#allocation9 + $0x4d0] sm:$0xff] }
 0x1b6   :  { %1162 = vmatpush1.msra.mxu0 %v491_v18  ;;  %1233 = vmatpush1.msra.mxu1 %v683_v19  ;;  %v791_v18 = vld [vmem:[#allocation9 + $0xad0] sm:$0xff]  ;;  %v594_v19 = vld [vmem:[#allocation9 + $0x4a8] sm:$0xff] }
 0x1b7   :  { %1163 = vmatprep.subr.mxu0 %v486_v20  ;;  %1234 = vmatprep.subr.mxu1 %v678_v21  ;;  %v786_v20 = vld [vmem:[#allocation9 + $0xaa8] sm:$0xff]  ;;  %v593_v21 = vld [vmem:[#allocation9 + $0x4a0] sm:$0xff] }
 0x1b8   :  { %1164 = vmatpush1.msra.mxu0 %v485_v22  ;;  %1235 = vmatpush1.msra.mxu1 %v677_v23  ;;  %v785_v22 = vld [vmem:[#allocation9 + $0xaa0] sm:$0xff]  ;;  %v588_v23 = vld [vmem:[#allocation9 + $0x478] sm:$0xff] }
 0x1b9   :  { %1165 = vmatprep.subr.mxu0 %v480_v24  ;;  %1236 = vmatprep.subr.mxu1 %v672_v29  ;;  %v780_v24 = vld [vmem:[#allocation9 + $0xa78] sm:$0xff]  ;;  %v587_v29 = vld [vmem:[#allocation9 + $0x470] sm:$0xff] }
 0x1ba   :  { %1166 = vmatpush1.msra.mxu0 %v479_v30  ;;  %1237 = vmatpush1.msra.mxu1 %v671_v31  ;;  %v779_v30 = vld [vmem:[#allocation9 + $0xa70] sm:$0xff]  ;;  %v582_v31 = vld [vmem:[#allocation9 + $0x448] sm:$0xff] }
 0x1bb   :  { %1167 = vmatprep.subr.mxu0 %v474_v32  ;;  %1238 = vmatprep.subr.mxu1 %v666_v33  ;;  %v774_v32 = vld [vmem:[#allocation9 + $0xa48] sm:$0xff]  ;;  %v581_v33 = vld [vmem:[#allocation9 + $0x440] sm:$0xff] }
 0x1bc   :  { %1168 = vmatpush1.msra.mxu0 %v473_v34  ;;  %1239 = vmatpush1.msra.mxu1 %v665_v35  ;;  %v773_v34 = vld [vmem:[#allocation9 + $0xa40] sm:$0xff]  ;;  %v576_v35 = vld [vmem:[#allocation9 + $0x418] sm:$0xff] }
 0x1bd   :  { %1169 = vmatprep.subr.mxu0 %v468_v36  ;;  %1240 = vmatprep.subr.mxu1 %v660_v37  ;;  %v768_v36 = vld [vmem:[#allocation9 + $0xa18] sm:$0xff]  ;;  %v575_v37 = vld [vmem:[#allocation9 + $0x410] sm:$0xff] }
 0x1be   :  { %1170 = vmatpush1.msra.mxu0 %v467_v38  ;;  %1241 = vmatpush1.msra.mxu1 %v659_v39  ;;  %v767_v38 = vld [vmem:[#allocation9 + $0xa10] sm:$0xff]  ;;  %v570_v39 = vld [vmem:[#allocation9 + $0x3e8] sm:$0xff] }
 0x1bf   :  { %1171 = vmatprep.subr.mxu0 %v462_v40  ;;  %1242 = vmatprep.subr.mxu1 %v654_v41  ;;  %v762_v40 = vld [vmem:[#allocation9 + $0x9e8] sm:$0xff]  ;;  %v569_v41 = vld [vmem:[#allocation9 + $0x3e0] sm:$0xff] }
 0x1c0   :  { %1172 = vmatpush1.msra.mxu0 %v461_v42  ;;  %1243 = vmatpush1.msra.mxu1 %v653_v43  ;;  %v761_v42 = vld [vmem:[#allocation9 + $0x9e0] sm:$0xff]  ;;  %v564_v43 = vld [vmem:[#allocation9 + $0x3b8] sm:$0xff] }
 0x1c1   :  { %1173 = vmatprep.subr.mxu0 %v456_v44  ;;  %1244 = vmatprep.subr.mxu1 %v648_v45  ;;  %v756_v44 = vld [vmem:[#allocation9 + $0x9b8] sm:$0xff]  ;;  %v563_v45 = vld [vmem:[#allocation9 + $0x3b0] sm:$0xff] }
 0x1c2   :  { %1174 = vmatpush1.msra.mxu0 %v455_v46  ;;  %1245 = vmatpush1.msra.mxu1 %v647_v47  ;;  %v755_v46 = vld [vmem:[#allocation9 + $0x9b0] sm:$0xff]  ;;  %v558_v47 = vld [vmem:[#allocation9 + $0x388] sm:$0xff] }
 0x1c3   :  { %1175 = vmatprep.subr.mxu0 %v450_v48  ;;  %1246 = vmatprep.subr.mxu1 %v642_v49  ;;  %v750_v48 = vld [vmem:[#allocation9 + $0x988] sm:$0xff]  ;;  %v557_v49 = vld [vmem:[#allocation9 + $0x380] sm:$0xff] }
 0x1c4   :  { %1176 = vmatpush1.msra.mxu0 %v449_v50  ;;  %1247 = vmatpush1.msra.mxu1 %v641_v51  ;;  %v749_v50 = vld [vmem:[#allocation9 + $0x980] sm:$0xff]  ;;  %v552_v51 = vld [vmem:[#allocation9 + $0x358] sm:$0xff] }
 0x1c5   :  { %1177 = vmatprep.subr.mxu0 %v636_v52  ;;  %1248 = vmatprep.subr.mxu1 %v828_v53  ;;  %v744_v52 = vld [vmem:[#allocation9 + $0x958] sm:$0xff]  ;;  %v551_v53 = vld [vmem:[#allocation9 + $0x350] sm:$0xff] }
 0x1c6   :  { %1178 = vmatpush2.msra.mxu0 %v635_v54  ;;  %1249 = vmatpush2.msra.mxu1 %v827_v55  ;;  %v743_v54 = vld [vmem:[#allocation9 + $0x950] sm:$0xff]  ;;  %v546_v55 = vld [vmem:[#allocation9 + $0x328] sm:$0xff] }
 0x1c7   :  { %1179 = vmatprep.subr.mxu0 %v630_v56  ;;  %1250 = vmatprep.subr.mxu1 %v822_v57  ;;  %v738_v56 = vld [vmem:[#allocation9 + $0x928] sm:$0xff]  ;;  %v545_v57 = vld [vmem:[#allocation9 + $0x320] sm:$0xff] }
 0x1c8   :  { %1180 = vmatpush2.msra.mxu0 %v629_v58  ;;  %1251 = vmatpush2.msra.mxu1 %v821_v59  ;;  %v737_v58 = vld [vmem:[#allocation9 + $0x920] sm:$0xff] }
 0x1c9   :  { %1181 = vmatprep.subr.mxu0 %v624_v60  ;;  %1252 = vmatprep.subr.mxu1 %v816_v26  ;;  %v1324_v59 = vld [vmem:[#allocation12 + $0xf8] sm:$0xff] }
 0x1ca   :  { %1182 = vmatpush2.msra.mxu0 %v623_v61  ;;  %1253 = vmatpush2.msra.mxu1 %v815_v27  ;;  %v1356_v60 = vld [vmem:[#allocation12 + $0x1f8] sm:$0xff]  ;;  %v1323_v27 = vld [vmem:[#allocation12 + $0xf0] sm:$0xff] }
 0x1cb   :  { %1183 = vmatprep.subr.mxu0 %v618_v62  ;;  %1254 = vmatprep.subr.mxu1 %v810_v63  ;;  %v1308_v26 = vld [vmem:[#allocation12 + $0x78] sm:$0xff]  ;;  %v1355_v62 = vld [vmem:[#allocation12 + $0x1f0] sm:$0xff] }
 0x1cc   :  { %1184 = vmatpush2.msra.mxu0 %v617_v0  ;;  %1255 = vmatpush2.msra.mxu1 %v809_v1  ;;  %v1340_v61 = vld [vmem:[#allocation12 + $0x178] sm:$0xff]  ;;  %v1307_v63 = vld [vmem:[#allocation12 + $0x70] sm:$0xff]  ;;  %v1322_v1 = vld [vmem:[#allocation12 + $0xe8] sm:$0xff] }
 0x1cd   :  { %1185 = vmatprep.subr.mxu0 %v612_v2  ;;  %1256 = vmatprep.subr.mxu1 %v804_v3  ;;  %v1339_v0 = vld [vmem:[#allocation12 + $0x170] sm:$0xff]  ;;  %v1354_v2 = vld [vmem:[#allocation12 + $0x1e8] sm:$0xff] }
 0x1ce   :  { %1186 = vmatpush2.msra.mxu0 %v611_v4  ;;  %1257 = vmatpush2.msra.mxu1 %v803_v5  ;;  %v1306_v3 = vld [vmem:[#allocation12 + $0x68] sm:$0xff]  ;;  %v1321_v5 = vld [vmem:[#allocation12 + $0xe0] sm:$0xff] }
 0x1cf   :  { %1187 = vmatprep.subr.mxu0 %v606_v6  ;;  %1258 = vmatprep.subr.mxu1 %v798_v10  ;;  %v1338_v4 = vld [vmem:[#allocation12 + $0x168] sm:$0xff]  ;;  %v1337_v6 = vld [vmem:[#allocation12 + $0x160] sm:$0xff]  ;;  %v1320_v10 = vld [vmem:[#allocation12 + $0xd8] sm:$0xff] }
 0x1d0   :  { %1188 = vmatpush2.msra.mxu0 %v605_v13  ;;  %1259 = vmatpush2.msra.mxu1 %v797_v14  ;;  %v1352_v13 = vld [vmem:[#allocation12 + $0x1d8] sm:$0xff] }
 0x1d1   :  { %1189 = vmatprep.subr.mxu0 %v600_v15  ;;  %1260 = vmatprep.subr.mxu1 %v792_v16  ;;  %v1304_v14 = vld [vmem:[#allocation12 + $0x58] sm:$0xff]  ;;  %v1319_v16 = vld [vmem:[#allocation12 + $0xd0] sm:$0xff] }
 0x1d2   :  { %1190 = vmatpush2.msra.mxu0 %v599_v17  ;;  %1261 = vmatpush2.msra.mxu1 %v791_v18  ;;  %v1336_v15 = vld [vmem:[#allocation12 + $0x158] sm:$0xff]  ;;  %v1351_v17 = vld [vmem:[#allocation12 + $0x1d0] sm:$0xff] }
 0x1d3   :  { %1191 = vmatprep.subr.mxu0 %v594_v19  ;;  %1262 = vmatprep.subr.mxu1 %v786_v20  ;;  %v1303_v18 = vld [vmem:[#allocation12 + $0x50] sm:$0xff]  ;;  %v1318_v20 = vld [vmem:[#allocation12 + $0xc8] sm:$0xff] }
 0x1d4   :  { %1192 = vmatpush2.msra.mxu0 %v593_v21  ;;  %1263 = vmatpush2.msra.mxu1 %v785_v22  ;;  %v1335_v19 = vld [vmem:[#allocation12 + $0x150] sm:$0xff]  ;;  %v1350_v21 = vld [vmem:[#allocation12 + $0x1c8] sm:$0xff] }
 0x1d5   :  { %1193 = vmatprep.subr.mxu0 %v588_v23  ;;  %1264 = vmatprep.subr.mxu1 %v780_v24  ;;  %v1302_v22 = vld [vmem:[#allocation12 + $0x48] sm:$0xff]  ;;  %v1317_v24 = vld [vmem:[#allocation12 + $0xc0] sm:$0xff] }
 0x1d6   :  { %1194 = vmatpush2.msra.mxu0 %v587_v29  ;;  %1265 = vmatpush2.msra.mxu1 %v779_v30  ;;  %v1334_v23 = vld [vmem:[#allocation12 + $0x148] sm:$0xff]  ;;  %v1349_v29 = vld [vmem:[#allocation12 + $0x1c0] sm:$0xff] }
 0x1d7   :  { %1195 = vmatprep.subr.mxu0 %v582_v31  ;;  %1266 = vmatprep.subr.mxu1 %v774_v32  ;;  %v1301_v30 = vld [vmem:[#allocation12 + $0x40] sm:$0xff]  ;;  %v1316_v32 = vld [vmem:[#allocation12 + $0xb8] sm:$0xff] }
 0x1d8   :  { %1196 = vmatpush2.msra.mxu0 %v581_v33  ;;  %1267 = vmatpush2.msra.mxu1 %v773_v34  ;;  %v1333_v31 = vld [vmem:[#allocation12 + $0x140] sm:$0xff]  ;;  %v1348_v33 = vld [vmem:[#allocation12 + $0x1b8] sm:$0xff] }
 0x1d9   :  { %1197 = vmatprep.subr.mxu0 %v576_v35  ;;  %1268 = vmatprep.subr.mxu1 %v768_v36  ;;  %v1300_v34 = vld [vmem:[#allocation12 + $0x38] sm:$0xff]  ;;  %v1315_v36 = vld [vmem:[#allocation12 + $0xb0] sm:$0xff] }
 0x1da   :  { %1198 = vmatpush2.msra.mxu0 %v575_v37  ;;  %1269 = vmatpush2.msra.mxu1 %v767_v38  ;;  %v1332_v35 = vld [vmem:[#allocation12 + $0x138] sm:$0xff]  ;;  %v1347_v37 = vld [vmem:[#allocation12 + $0x1b0] sm:$0xff] }
 0x1db   :  { %1199 = vmatprep.subr.mxu0 %v570_v39  ;;  %1270 = vmatprep.subr.mxu1 %v762_v40  ;;  %v1299_v38 = vld [vmem:[#allocation12 + $0x30] sm:$0xff]  ;;  %v1314_v40 = vld [vmem:[#allocation12 + $0xa8] sm:$0xff] }
 0x1dc   :  { %1200 = vmatpush2.msra.mxu0 %v569_v41  ;;  %1271 = vmatpush2.msra.mxu1 %v761_v42  ;;  %v1331_v39 = vld [vmem:[#allocation12 + $0x130] sm:$0xff]  ;;  %v1346_v41 = vld [vmem:[#allocation12 + $0x1a8] sm:$0xff] }
 0x1dd   :  { %1201 = vmatprep.subr.mxu0 %v564_v43  ;;  %1272 = vmatprep.subr.mxu1 %v756_v44  ;;  %v1298_v42 = vld [vmem:[#allocation12 + $0x28] sm:$0xff]  ;;  %v1313_v44 = vld [vmem:[#allocation12 + $0xa0] sm:$0xff] }
 0x1de   :  { %1202 = vmatpush2.msra.mxu0 %v563_v45  ;;  %1273 = vmatpush2.msra.mxu1 %v755_v46  ;;  %v1330_v43 = vld [vmem:[#allocation12 + $0x128] sm:$0xff]  ;;  %v1345_v45 = vld [vmem:[#allocation12 + $0x1a0] sm:$0xff] }
 0x1df   :  { %1203 = vmatprep.subr.mxu0 %v558_v47  ;;  %1274 = vmatprep.subr.mxu1 %v750_v48  ;;  %v1297_v46 = vld [vmem:[#allocation12 + $0x20] sm:$0xff]  ;;  %v1312_v48 = vld [vmem:[#allocation12 + $0x98] sm:$0xff] }
 0x1e0   :  { %1204 = vmatpush2.msra.mxu0 %v557_v49  ;;  %1275 = vmatpush2.msra.mxu1 %v749_v50  ;;  %v1329_v47 = vld [vmem:[#allocation12 + $0x120] sm:$0xff]  ;;  %v1344_v49 = vld [vmem:[#allocation12 + $0x198] sm:$0xff] }
 0x1e1   :  { %1205 = vmatprep.subr.mxu0 %v552_v51  ;;  %1276 = vmatprep.subr.mxu1 %v744_v52  ;;  %v1296_v50 = vld [vmem:[#allocation12 + $0x18] sm:$0xff]  ;;  %v1311_v52 = vld [vmem:[#allocation12 + $0x90] sm:$0xff] }
 0x1e2   :  { %1206 = vmatpush2.msra.mxu0 %v551_v53  ;;  %1277 = vmatpush2.msra.mxu1 %v743_v54  ;;  %v1328_v51 = vld [vmem:[#allocation12 + $0x118] sm:$0xff]  ;;  %v1343_v53 = vld [vmem:[#allocation12 + $0x190] sm:$0xff] }
 0x1e3   :  { %1207 = vmatprep.subr.mxu0 %v546_v55  ;;  %1278 = vmatprep.subr.mxu1 %v738_v56  ;;  %v1295_v54 = vld [vmem:[#allocation12 + $0x10] sm:$0xff]  ;;  %v1310_v56 = vld [vmem:[#allocation12 + $0x88] sm:$0xff] }
 0x1e4   :  { %1208 = vmatpush2.msra.mxu0 %v545_v57  ;;  %1279 = vmatpush2.msra.mxu1 %v737_v58  ;;  %v1327_v55 = vld [vmem:[#allocation12 + $0x110] sm:$0xff]  ;;  %v1342_v57 = vld [vmem:[#allocation12 + $0x188] sm:$0xff] }
 0x1e5   :  { %1210 = vmatmul.mubr.f32.vlgmr.msra.gmra.mxu0 %v2010_v28  ;;  %1281 = vmatmul.mubr.f32.vlgmr.msra.gmra.mxu1 %v2004_v25  ;;  %v1353_v28 = vld [vmem:[#allocation12 + $0x1e0] sm:$0xff]  ;;  %v1294_v58 = vld [vmem:[#allocation12 + $0x8] sm:$0xff] }
 0x1e6   :  { %1626 = vmatprep.subr.mxu0 %v1324_v59  ;;  %1661 = vmatprep.subr.mxu1 %v1356_v60  ;;  %v1305_v25 = vld [vmem:[#allocation12 + $0x60] sm:$0xff]  ;;  %v1326_v59 = vld [vmem:[#allocation12 + $0x108] sm:$0xff] }
 0x1e7   :  { %1627 = vmatpush3.msra.mxu0 %v1308_v26  ;;  %1662 = vmatpush3.msra.mxu1 %v1340_v61  ;;  %v1309_v60 = vld [vmem:[#allocation12 + $0x80] sm:$0xff] }
 0x1e8   :  { %1628 = vmatprep.subr.mxu0 %v1323_v27  ;;  %1663 = vmatprep.subr.mxu1 %v1355_v62  ;;  %v1341_v26 = vld [vmem:[#allocation12 + $0x180] sm:$0xff]  ;;  %v1388_v62 = vld [vmem:[#allocation12 + $0x2f8] sm:$0xff] }
 0x1e9   :  { %1629 = vmatpush3.msra.mxu0 %v1307_v63  ;;  %1664 = vmatpush3.msra.mxu1 %v1339_v0  ;;  %v1293_v61 = vld [vmem:[#allocation12] sm:$0xff]  ;;  %v2024_v63 = vld [vmem:[#allocation11] sm:$0x3f] }
 0x1ea   :  { %1630 = vmatprep.subr.mxu0 %v1322_v1  ;;  %1665 = vmatprep.subr.mxu1 %v1354_v2  ;;  %v1325_v27 = vld [vmem:[#allocation12 + $0x100] sm:$0xff]  ;;  %v834_v0 = vrot.slane %v2024_v63, %v419_v9  ;;  %v838_v1 = vrot.slane %v2024_v63, %v423_v11  ;;  %v1386_v9 = vld [vmem:[#allocation12 + $0x2e8] sm:$0xff] }
 0x1eb   :  { %1631 = vmatpush3.msra.mxu0 %v1306_v3  ;;  %1666 = vmatpush3.msra.mxu1 %v1338_v4  ;;  %v1385_v11 = vld [vmem:[#allocation12 + $0x2e0] sm:$0xff] }
 0x1ec   :  { %1632 = vmatprep.subr.mxu0 %v1321_v5  ;;  %1667 = vmatprep.subr.mxu1 %v1353_v28 }
 0x1ed   :  { %1633 = vmatpush3.msra.mxu0 %v1305_v25  ;;  %1668 = vmatpush3.msra.mxu1 %v1337_v6 }
 0x1ee   :  { %1634 = vmatprep.subr.mxu0 %v1320_v10  ;;  %1669 = vmatprep.subr.mxu1 %v1352_v13 }
 0x1ef   :  { %1635 = vmatpush3.msra.mxu0 %v1304_v14  ;;  %1670 = vmatpush3.msra.mxu1 %v1336_v15  ;;  %v1372_v15 = vld [vmem:[#allocation12 + $0x278] sm:$0xff] }
 0x1f0   :  { %1636 = vmatprep.subr.mxu0 %v1319_v16  ;;  %1671 = vmatprep.subr.mxu1 %v1351_v17  ;;  %v1387_v16 = vld [vmem:[#allocation12 + $0x2f0] sm:$0xff] }
 0x1f1   :  { %1637 = vmatpush3.msra.mxu0 %v1303_v18  ;;  %1672 = vmatpush3.msra.mxu1 %v1335_v19  ;;  %v1371_v17 = vld [vmem:[#allocation12 + $0x270] sm:$0xff]  ;;  %v1370_v18 = vld [vmem:[#allocation12 + $0x268] sm:$0xff]  ;;  %v1369_v19 = vld [vmem:[#allocation12 + $0x260] sm:$0xff] }
 0x1f2   :  { %1638 = vmatprep.subr.mxu0 %v1318_v20  ;;  %1673 = vmatprep.subr.mxu1 %v1350_v21  ;;  %v1384_v20 = vld [vmem:[#allocation12 + $0x2d8] sm:$0xff] }
 0x1f3   :  { %1639 = vmatpush3.msra.mxu0 %v1302_v22  ;;  %1674 = vmatpush3.msra.mxu1 %v1334_v23  ;;  %v1368_v21 = vld [vmem:[#allocation12 + $0x258] sm:$0xff]  ;;  %v1383_v22 = vld [vmem:[#allocation12 + $0x2d0] sm:$0xff] }
 0x1f4   :  { %1640 = vmatprep.subr.mxu0 %v1317_v24  ;;  %1675 = vmatprep.subr.mxu1 %v1349_v29  ;;  %v1367_v23 = vld [vmem:[#allocation12 + $0x250] sm:$0xff]  ;;  %v1382_v24 = vld [vmem:[#allocation12 + $0x2c8] sm:$0xff] }
 0x1f5   :  { %1641 = vmatpush3.msra.mxu0 %v1301_v30  ;;  %1676 = vmatpush3.msra.mxu1 %v1333_v31  ;;  %v1366_v29 = vld [vmem:[#allocation12 + $0x248] sm:$0xff]  ;;  %v1381_v30 = vld [vmem:[#allocation12 + $0x2c0] sm:$0xff] }
 0x1f6   :  { %1642 = vmatprep.subr.mxu0 %v1316_v32  ;;  %1677 = vmatprep.subr.mxu1 %v1348_v33  ;;  %v1365_v31 = vld [vmem:[#allocation12 + $0x240] sm:$0xff]  ;;  %v1380_v32 = vld [vmem:[#allocation12 + $0x2b8] sm:$0xff] }
 0x1f7   :  { %1643 = vmatpush3.msra.mxu0 %v1300_v34  ;;  %1678 = vmatpush3.msra.mxu1 %v1332_v35  ;;  %v1364_v33 = vld [vmem:[#allocation12 + $0x238] sm:$0xff]  ;;  %v1379_v34 = vld [vmem:[#allocation12 + $0x2b0] sm:$0xff] }
 0x1f8   :  { %1644 = vmatprep.subr.mxu0 %v1315_v36  ;;  %1679 = vmatprep.subr.mxu1 %v1347_v37  ;;  %v1363_v35 = vld [vmem:[#allocation12 + $0x230] sm:$0xff]  ;;  %v1378_v36 = vld [vmem:[#allocation12 + $0x2a8] sm:$0xff] }
 0x1f9   :  { %1645 = vmatpush3.msra.mxu0 %v1299_v38  ;;  %1680 = vmatpush3.msra.mxu1 %v1331_v39  ;;  %v1362_v37 = vld [vmem:[#allocation12 + $0x228] sm:$0xff]  ;;  %v1377_v38 = vld [vmem:[#allocation12 + $0x2a0] sm:$0xff] }
 0x1fa   :  { %1646 = vmatprep.subr.mxu0 %v1314_v40  ;;  %1681 = vmatprep.subr.mxu1 %v1346_v41  ;;  %v1361_v39 = vld [vmem:[#allocation12 + $0x220] sm:$0xff]  ;;  %v1376_v40 = vld [vmem:[#allocation12 + $0x298] sm:$0xff] }
 0x1fb   :  { %1647 = vmatpush3.msra.mxu0 %v1298_v42  ;;  %1682 = vmatpush3.msra.mxu1 %v1330_v43  ;;  %v1360_v41 = vld [vmem:[#allocation12 + $0x218] sm:$0xff]  ;;  %v1375_v42 = vld [vmem:[#allocation12 + $0x290] sm:$0xff] }
 0x1fc   :  { %1648 = vmatprep.subr.mxu0 %v1313_v44  ;;  %1683 = vmatprep.subr.mxu1 %v1345_v45  ;;  %v1359_v43 = vld [vmem:[#allocation12 + $0x210] sm:$0xff]  ;;  %v1374_v44 = vld [vmem:[#allocation12 + $0x288] sm:$0xff] }
 0x1fd   :  { %1649 = vmatpush3.msra.mxu0 %v1297_v46  ;;  %1684 = vmatpush3.msra.mxu1 %v1329_v47  ;;  %v1358_v45 = vld [vmem:[#allocation12 + $0x208] sm:$0xff]  ;;  %v1373_v46 = vld [vmem:[#allocation12 + $0x280] sm:$0xff] }
 0x1fe   :  { %1650 = vmatprep.subr.mxu0 %v1312_v48  ;;  %1685 = vmatprep.subr.mxu1 %v1344_v49  ;;  %v1357_v47 = vld [vmem:[#allocation12 + $0x200] sm:$0xff]  ;;  %v842_v48 = vrot.slane %v2024_v63, %v427_v8  ;;  %v846_v49 = vrot.slane %v2024_v63, %v431_v12  ;;  %v853_v8 = vsub.s32 5, %v1990_v7 }
 0x1ff   :  { %1651 = vmatpush3.msra.mxu0 %v1296_v50  ;;  %1686 = vmatpush3.msra.mxu1 %v1328_v51 }
 0x200   :  { %1652 = vmatprep.subr.mxu0 %v1311_v52  ;;  %1687 = vmatprep.subr.mxu1 %v1343_v53  ;;  %v854_v12 = vrot.slane %v2024_v63, %v853_v8 }
 0x201   :  { %1653 = vmatpush3.msra.mxu0 %v1295_v54  ;;  %1688 = vmatpush3.msra.mxu1 %v1327_v55 }
 0x202   :  { %1654 = vmatprep.subr.mxu0 %v1310_v56  ;;  %1689 = vmatprep.subr.mxu1 %v1342_v57 }
 0x203   :  { %1655 = vmatpush3.msra.mxu0 %v1294_v58  ;;  %1690 = vmatpush3.msra.mxu1 %v1326_v59 }
 0x204   :  { %1656 = vmatprep.subr.mxu0 %v1309_v60  ;;  %1691 = vmatprep.subr.mxu1 %v1341_v26  ;;  %v849_v60 = vsub.s32 4, %v1990_v7 }
 0x205   :  { %1657 = vmatpush3.msra.mxu0 %v1293_v61  ;;  %1692 = vmatpush3.msra.mxu1 %v1325_v27 }
 0x206   :  { %1696 = vmatprep.subr.mxu0 %v1388_v62  ;;  %v850_v26 = vrot.slane %v2024_v63, %v849_v60 }
 0x222   :  { %v927_v2 = vpop.f32.mrf.mxu0  ;;  %v998_v3 = vpop.f32.mrf.mxu1 }
 0x223   :  { %v928_v4 = vadd.f32 %v927_v2, %v834_v0 }
 0x224   :  { %v929_v5 = vpop.f32.mrf.mxu0  ;;  %v1000_v6 = vpop.f32.mrf.mxu1 }
 0x225   :  { %v930_v28 = vadd.f32 %v929_v5, %v838_v1  ;;  %v999_v25 = vadd.f32 %v998_v3, %v928_v4 }
 0x227   :  { %v1001_v10 = vadd.f32 %v1000_v6, %v930_v28  ;;  %v1287_v14 = vmax.f32 %v999_v25, 0.0 }
 0x229   :  { %v1288_v13 = vmax.f32 %v1001_v10, 0.0 }
 0x22b   :  { %1460 = vmatprep.mubr.f32.mxu0 %v1288_v13 }
 0x22c   :  { %1461 = vmatmul.mubr.f32.vlgmr.msra.gmra.mxu0 %v1287_v14  ;;  %v1625_v14 = vld [vmem:[#allocation14] ss:$0 sm:$0xff] }
 0x22d   :  { %1697 = vmatpush3.msra.mxu0 %v1372_v15 }
 0x22e   :  { %1698 = vmatprep.subr.mxu0 %v1387_v16 }
 0x22f   :  { %1699 = vmatpush3.msra.mxu0 %v1371_v17 }
 0x230   :  { %1700 = vmatprep.subr.mxu0 %v1386_v9 }
 0x231   :  { %1701 = vmatpush3.msra.mxu0 %v1370_v18 }
 0x232   :  { %1702 = vmatprep.subr.mxu0 %v1385_v11 }
 0x233   :  { %1703 = vmatpush3.msra.mxu0 %v1369_v19 }
 0x234   :  { %1704 = vmatprep.subr.mxu0 %v1384_v20 }
 0x235   :  { %1705 = vmatpush3.msra.mxu0 %v1368_v21 }
 0x236   :  { %1706 = vmatprep.subr.mxu0 %v1383_v22 }
 0x237   :  { %1707 = vmatpush3.msra.mxu0 %v1367_v23 }
 0x238   :  { %1708 = vmatprep.subr.mxu0 %v1382_v24 }
 0x239   :  { %1709 = vmatpush3.msra.mxu0 %v1366_v29 }
 0x23a   :  { %1710 = vmatprep.subr.mxu0 %v1381_v30 }
 0x23b   :  { %1711 = vmatpush3.msra.mxu0 %v1365_v31 }
 0x23c   :  { %1712 = vmatprep.subr.mxu0 %v1380_v32 }
 0x23d   :  { %1713 = vmatpush3.msra.mxu0 %v1364_v33 }
 0x23e   :  { %1714 = vmatprep.subr.mxu0 %v1379_v34 }
 0x23f   :  { %1715 = vmatpush3.msra.mxu0 %v1363_v35 }
 0x240   :  { %1716 = vmatprep.subr.mxu0 %v1378_v36 }
 0x241   :  { %1717 = vmatpush3.msra.mxu0 %v1362_v37 }
 0x242   :  { %1718 = vmatprep.subr.mxu0 %v1377_v38 }
 0x243   :  { %1719 = vmatpush3.msra.mxu0 %v1361_v39 }
 0x244   :  { %1720 = vmatprep.subr.mxu0 %v1376_v40 }
 0x245   :  { %1721 = vmatpush3.msra.mxu0 %v1360_v41 }
 0x246   :  { %1722 = vmatprep.subr.mxu0 %v1375_v42 }
 0x247   :  { %1723 = vmatpush3.msra.mxu0 %v1359_v43 }
 0x248   :  { %1724 = vmatprep.subr.mxu0 %v1374_v44 }
 0x249   :  { %1725 = vmatpush3.msra.mxu0 %v1358_v45 }
 0x24a   :  { %1726 = vmatprep.subr.mxu0 %v1373_v46 }
 0x24b   :  { %1727 = vmatpush3.msra.mxu0 %v1357_v47 }
 0x263   :  { %v1069_v50 = vpop.f32.mrf.mxu0  ;;  %v1140_v51 = vpop.f32.mrf.mxu1 }
 0x264   :  { %v1070_v52 = vadd.f32 %v1069_v50, %v842_v48 }
 0x265   :  { %v1071_v53 = vpop.f32.mrf.mxu0  ;;  %v1142_v56 = vpop.f32.mrf.mxu1 }
 0x266   :  { %v1072_v54 = vadd.f32 %v1071_v53, %v846_v49  ;;  %v1141_v55 = vadd.f32 %v1140_v51, %v1070_v52 }
 0x268   :  { %v1143_v57 = vadd.f32 %v1142_v56, %v1072_v54  ;;  %v1289_v59 = vmax.f32 %v1141_v55, 0.0 }
 0x26a   :  { %v1290_v58 = vmax.f32 %v1143_v57, 0.0 }
 0x26c   :  { %1530 = vmatprep.mubr.f32.mxu1 %v1290_v58 }
 0x26d   :  { %1531 = vmatmul.mubr.f32.vlgmr.msra.gmra.mxu1 %v1289_v59 }
 0x2a5   :  { %v1211_v61 = vpop.f32.mrf.mxu0  ;;  %v1282_v27 = vpop.f32.mrf.mxu1 }
 0x2a6   :  { %v1212_v62 = vadd.f32 %v1211_v61, %v850_v26 }
 0x2a7   :  { %v1213_v0 = vpop.f32.mrf.mxu0  ;;  %v1284_v3 = vpop.f32.mrf.mxu1 }
 0x2a8   :  { %v1214_v1 = vadd.f32 %v1213_v0, %v854_v12  ;;  %v1283_v2 = vadd.f32 %v1282_v27, %v1212_v62 }
 0x2aa   :  { %v1285_v4 = vadd.f32 %v1284_v3, %v1214_v1  ;;  %v1291_v28 = vmax.f32 %v1283_v2, 0.0 }
 0x2ac   :  { %v1292_v5 = vmax.f32 %v1285_v4, 0.0 }
 0x2ae   :  { %1600 = vmatprep.mubr.f32.mxu0 %v1292_v5 }
 0x2af   :  { %1601 = vmatmul.mubr.f32.vlgmr.msra.gmra.mxu0 %v1291_v28 }
 0x2ec   :  { %v1658_v25 = vpop.f32.mrf.mxu0 }
 0x2ee   :  { %v1659_v10 = vpop.f32.mrf.mxu0 }
 0x2ef   :  { %v1660_v13 = vadd.f32 %v1659_v10, %v1658_v25 }
 0x2f1   :  { %v1463_v16 = vadd.f32 %v1660_v13, %v1625_v14 }
 0x32d   :  { %v1693_v6 = vpop.f32.mrf.mxu1 }
 0x32f   :  { %v1694_v7 = vpop.f32.mrf.mxu1 }
 0x330   :  { %v1695_v15 = vadd.f32 %v1694_v7, %v1693_v6 }
 0x332   :  { %v1533_v9 = vadd.f32 %v1695_v15, %v1463_v16 }
 0x36f   :  { %v1728_v63 = vpop.f32.mrf.mxu0 }
 0x371   :  { %v1729_v17 = vpop.f32.mrf.mxu0 }
 0x372   :  { %v1730_v18 = vadd.f32 %v1729_v17, %v1728_v63 }
 0x374   :  { %v1603_v11 = vadd.f32 %v1730_v18, %v1533_v9 }
 0x376   :  { %1606 = vst [vmem:[#allocation15] sm:$0xff] %v1603_v11 }
 0x377   :  { %1896 = shalt.err (!%p1893_p11)
}
 0x378   :  { %1616 = dma.vmem_to_hbm [thread:$0]  %s1614_s6, 128, %s2052_s7, [#allocation5]  }
 0x379   :  { %1913 = dma.done.wait [#allocation5], 128  }
 0x37a   :  { %1914 = vsyncadd [#allocation5], 4294967168 }
 0x37b   :  { %1620 = vsyncpa [#allocation4], 1 }
 0x37c   :  { %1621 = vsyncpa [#allocation7], 1 }
 0x37d   :  { %1622 = vsyncpa [#allocation10], 1 }
 0x37e   :  { %1623 = vsyncpa [#allocation13], 1 }
 0x37f   :  { %1624 = vsyncpa [#allocation5], 1 }

</bundles_post_ra>
